<compile_context>
chip_gen: v6e
topology: v6e:2x2x1
jax: 0.10.0
libtpu: 0.0.40
codegen_flags: <defaults>
</compile_context>

<pallas_src>
import jax
import jax.numpy as jnp
from jax.experimental import pallas as pl
from jax.experimental.pallas import tpu as pltpu

# ---------------- small roberta-like config ----------------
VOCAB = 128
MAX_POS = 64
HIDDEN = 32
N_HEADS = 4
HEAD_DIM = HIDDEN // N_HEADS
FFN = 64
N_LAYERS = 2
NUM_LABELS = 6            # stands in for len(label2id)
NUM_LABELS_PAD = 128      # lane-dense padded classifier width
LN_EPS = 1e-5


# ---------------- fused forward kernel ----------------
def _fused_forward_kernel(
    x_ref,                      # (1, S, H)   embedded tokens for this batch element
    mask_ref,                   # (1, 1, S)   attention mask (1.0 = attend)
    emb_g_ref, emb_b_ref,       # (1, H)      embedding layernorm
    wqkv_ref, bqkv_ref,         # (L, H, 3H), (L, 1, 3H)   fused Q/K/V projection
    wo_ref, bo_ref,             # (L, H, H),  (L, 1, H)
    ln1_g_ref, ln1_b_ref,       # (L, 1, H)
    ffn1_w_ref, ffn1_b_ref,     # (L, H, F),  (L, 1, F)
    ffn2_w_ref, ffn2_b_ref,     # (L, F, H),  (L, 1, H)
    ln2_g_ref, ln2_b_ref,       # (L, 1, H)
    cls_w_ref, cls_b_ref,       # (H, NLP),   (1, NLP)    (padded to 128 lanes)
    o_ref,                      # (1, 1, NLP)
):
    H = HIDDEN
    hd = HEAD_DIM
    scale = jnp.float32(1.0 / (hd ** 0.5))

    def layernorm(y, g, b):
        # f32 math (v5e VPU/EUP have no bf16); residual add is fused by the caller.
        mu = jnp.mean(y, axis=-1, keepdims=True)
        var = jnp.mean(jnp.square(y - mu), axis=-1, keepdims=True)
        return (y - mu) * jax.lax.rsqrt(var + LN_EPS) * g + b

    def gelu(y):
        # tanh-approximate GELU (EUP-friendly).
        # TODO(synk): HF RoBERTa uses exact erf-GELU; tiny numerical drift.
        c = jnp.float32(0.7978845608028654)  # sqrt(2/pi)
        return 0.5 * y * (1.0 + jnp.tanh(c * (y + 0.044715 * y * y * y)))

    x = x_ref[0]                                         # (S, H)
    x = layernorm(x, emb_g_ref[...], emb_b_ref[...])

    # additive key mask, shared across heads / query rows
    key_bias = (1.0 - mask_ref[0]) * jnp.float32(-1e9)   # (1, S)

    for li in range(N_LAYERS):
        # ---- fused QKV projection: one GEMM per layer ----
        qkv = (
            jnp.dot(x, wqkv_ref[li], preferred_element_type=jnp.float32)
            + bqkv_ref[li]
        )                                                 # (S, 3H)

        # ---- multi-head attention (heads split in-kernel, no XLA transposes) ----
        heads = []
        for h in range(N_HEADS):
            lo = h * hd
            q = qkv[:, lo:lo + hd]                        # (S, hd)
            k = qkv[:, H + lo:H + lo + hd]                # (S, hd)
            v = qkv[:, 2 * H + lo:2 * H + lo + hd]        # (S, hd)

            s = jnp.dot(q, k.T, preferred_element_type=jnp.float32) * scale
            s = s + key_bias                              # mask key positions
            s = s - jnp.max(s, axis=-1, keepdims=True)
            p = jnp.exp(s)
            p = p * pl.reciprocal(jnp.sum(p, axis=-1, keepdims=True), approx=True)
            heads.append(jnp.dot(p, v, preferred_element_type=jnp.float32))
        ctx = jnp.concatenate(heads, axis=-1)             # (S, H)

        attn_out = (
            jnp.dot(ctx, wo_ref[li], preferred_element_type=jnp.float32)
            + bo_ref[li]
        )
        # residual + layernorm fused (all in VMEM)
        x = layernorm(x + attn_out, ln1_g_ref[li], ln1_b_ref[li])

        # ---- feed-forward ----
        h1 = (
            jnp.dot(x, ffn1_w_ref[li], preferred_element_type=jnp.float32)
            + ffn1_b_ref[li]
        )
        h1 = gelu(h1)
        ffn_out = (
            jnp.dot(h1, ffn2_w_ref[li], preferred_element_type=jnp.float32)
            + ffn2_b_ref[li]
        )
        x = layernorm(x + ffn_out, ln2_g_ref[li], ln2_b_ref[li])

    # ---- CLS pooling + classifier head ----
    pooled = x[0:1, :]                                    # last_hidden_state[:, 0]
    # TODO(synk): dropout(p=0.3) is identity in eval mode; training-mode dropout
    # would use pltpu.prng_seed / pltpu.prng_random_bits here.
    logits = (
        jnp.dot(pooled, cls_w_ref[...], preferred_element_type=jnp.float32)
        + cls_b_ref[...]
    )                                                     # (1, NLP) lane-dense
    o_ref[...] = logits.reshape(1, 1, NUM_LABELS_PAD)


# ---------------- parameter init (deterministic, synthetic) ----------------
def init_params(key):
    def dn(k, shape):
        return jax.random.normal(k, shape, jnp.float32) * 0.02

    k = jax.random.split(key, 8)
    H, F, L = HIDDEN, FFN, N_LAYERS
    params = {
        "word_emb": dn(k[0], (VOCAB, H)),
        "pos_emb": dn(k[1], (MAX_POS, H)),
        "emb_ln_g": jnp.ones((1, H), jnp.float32),
        "emb_ln_b": jnp.zeros((1, H), jnp.float32),
        # per-layer weights stacked along a leading layer axis (stay VMEM-resident)
        "wqkv": dn(k[2], (L, H, 3 * H)),       # fused [wq | wk | wv]
        "bqkv": jnp.zeros((L, 1, 3 * H), jnp.float32),
        "wo": dn(k[3], (L, H, H)),
        "bo": jnp.zeros((L, 1, H), jnp.float32),
        "ln1_g": jnp.ones((L, 1, H), jnp.float32),
        "ln1_b": jnp.zeros((L, 1, H), jnp.float32),
        "ffn1_w": dn(k[4], (L, H, F)),
        "ffn1_b": jnp.zeros((L, 1, F), jnp.float32),
        "ffn2_w": dn(k[5], (L, F, H)),
        "ffn2_b": jnp.zeros((L, 1, H), jnp.float32),
        "ln2_g": jnp.ones((L, 1, H), jnp.float32),
        "ln2_b": jnp.zeros((L, 1, H), jnp.float32),
    }
    # classifier, padded to 128 output columns for a lane-dense output store
    cls_w = dn(k[6], (H, NUM_LABELS))
    params["cls_w"] = (
        jnp.zeros((H, NUM_LABELS_PAD), jnp.float32).at[:, :NUM_LABELS].set(cls_w)
    )
    params["cls_b"] = jnp.zeros((1, NUM_LABELS_PAD), jnp.float32)
    return params


# ---------------- forward pass (single fused pallas_call) ----------------
@jax.jit
def emotion_classifier_forward(params, input_ids, attention_mask):
    B, S = input_ids.shape
    H, F, L = HIDDEN, FFN, N_LAYERS

    # embedding gather is glue (XLA); everything after it is one Pallas kernel.
    x = jnp.take(params["word_emb"], input_ids, axis=0)                  # (B, S, H)
    positions = jnp.arange(S, dtype=jnp.int32) + 2   # RoBERTa offset (padding_idx+1)
    x = x + jnp.take(params["pos_emb"], positions, axis=0)[None, :, :]
    mask_f = attention_mask.astype(jnp.float32).reshape(B, 1, S)

    logits_padded = pl.pallas_call(
        _fused_forward_kernel,
        grid=(B,),
        out_shape=jax.ShapeDtypeStruct((B, 1, NUM_LABELS_PAD), jnp.float32),
        in_specs=[
            pl.BlockSpec((1, S, H), lambda b: (b, 0, 0)),            # x
            pl.BlockSpec((1, 1, S), lambda b: (b, 0, 0)),            # mask
            pl.BlockSpec((1, H), lambda b: (0, 0)),                  # emb_ln_g
            pl.BlockSpec((1, H), lambda b: (0, 0)),                  # emb_ln_b
            pl.BlockSpec((L, H, 3 * H), lambda b: (0, 0, 0)),        # wqkv
            pl.BlockSpec((L, 1, 3 * H), lambda b: (0, 0, 0)),        # bqkv
            pl.BlockSpec((L, H, H), lambda b: (0, 0, 0)),            # wo
            pl.BlockSpec((L, 1, H), lambda b: (0, 0, 0)),            # bo
            pl.BlockSpec((L, 1, H), lambda b: (0, 0, 0)),            # ln1_g
            pl.BlockSpec((L, 1, H), lambda b: (0, 0, 0)),            # ln1_b
            pl.BlockSpec((L, H, F), lambda b: (0, 0, 0)),            # ffn1_w
            pl.BlockSpec((L, 1, F), lambda b: (0, 0, 0)),            # ffn1_b
            pl.BlockSpec((L, F, H), lambda b: (0, 0, 0)),            # ffn2_w
            pl.BlockSpec((L, 1, H), lambda b: (0, 0, 0)),            # ffn2_b
            pl.BlockSpec((L, 1, H), lambda b: (0, 0, 0)),            # ln2_g
            pl.BlockSpec((L, 1, H), lambda b: (0, 0, 0)),            # ln2_b
            pl.BlockSpec((H, NUM_LABELS_PAD), lambda b: (0, 0)),     # cls_w
            pl.BlockSpec((1, NUM_LABELS_PAD), lambda b: (0, 0)),     # cls_b
        ],
        out_specs=pl.BlockSpec((1, 1, NUM_LABELS_PAD), lambda b: (b, 0, 0)),
        compiler_params=pltpu.CompilerParams(
            dimension_semantics=("parallel",)),       # shards batch across TCs on v7x
    )(
        x, mask_f,
        params["emb_ln_g"], params["emb_ln_b"],
        params["wqkv"], params["bqkv"], params["wo"], params["bo"],
        params["ln1_g"], params["ln1_b"],
        params["ffn1_w"], params["ffn1_b"], params["ffn2_w"], params["ffn2_b"],
        params["ln2_g"], params["ln2_b"],
        params["cls_w"], params["cls_b"],
    )
    return logits_padded[:, 0, :NUM_LABELS]


# ---------------- main ----------------
if __name__ == "__main__":
    key = jax.random.PRNGKey(0)
    pkey, ikey = jax.random.split(key)

    params = init_params(pkey)

    B, S = 2, 8
    input_ids = jax.random.randint(ikey, (B, S), 0, VOCAB, dtype=jnp.int32)
    attention_mask = jnp.array(
        [[1, 1, 1, 1, 1, 1, 1, 1],
         [1, 1, 1, 1, 1, 0, 0, 0]], dtype=jnp.int32)

    logits = emotion_classifier_forward(params, input_ids, attention_mask)
    logits = jax.block_until_ready(logits)
    assert logits.shape == (B, NUM_LABELS)
    assert bool(jnp.all(jnp.isfinite(logits)))
    print("KERNEL_OK")
</pallas_src>

<mosaic_0001>
module attributes {stable_mosaic.version = 11 : i64} {
  func.func @_fused_forward_kernel(%arg0: i32, %arg1: memref<1x8x32xf32, #tpu.memory_space<vmem>>, %arg2: memref<1x1x8xf32, #tpu.memory_space<vmem>>, %arg3: memref<1x32xf32, #tpu.memory_space<vmem>>, %arg4: memref<1x32xf32, #tpu.memory_space<vmem>>, %arg5: memref<2x32x96xf32, #tpu.memory_space<vmem>>, %arg6: memref<2x1x96xf32, #tpu.memory_space<vmem>>, %arg7: memref<2x32x32xf32, #tpu.memory_space<vmem>>, %arg8: memref<2x1x32xf32, #tpu.memory_space<vmem>>, %arg9: memref<2x1x32xf32, #tpu.memory_space<vmem>>, %arg10: memref<2x1x32xf32, #tpu.memory_space<vmem>>, %arg11: memref<2x32x64xf32, #tpu.memory_space<vmem>>, %arg12: memref<2x1x64xf32, #tpu.memory_space<vmem>>, %arg13: memref<2x64x32xf32, #tpu.memory_space<vmem>>, %arg14: memref<2x1x32xf32, #tpu.memory_space<vmem>>, %arg15: memref<2x1x32xf32, #tpu.memory_space<vmem>>, %arg16: memref<2x1x32xf32, #tpu.memory_space<vmem>>, %arg17: memref<32x128xf32, #tpu.memory_space<vmem>>, %arg18: memref<1x128xf32, #tpu.memory_space<vmem>>, %arg19: memref<1x1x128xf32, #tpu.memory_space<vmem>>) attributes {dimension_semantics = [#tpu.dimension_semantics<parallel>], iteration_bounds = array<i64: 2>, scalar_prefetch = 0 : i64, scratch_operands = 0 : i64, tpu.core_type = #tpu.core_type<tc>, window_params = [{transform_indices = @transform_0, window_bounds = array<i64: 1, 8, 32>}, {transform_indices = @transform_1, window_bounds = array<i64: 1, 1, 8>}, {pipeline_mode = #tpu.pipeline_mode<synchronous>, transform_indices = @transform_2, window_bounds = array<i64: 1, 32>}, {pipeline_mode = #tpu.pipeline_mode<synchronous>, transform_indices = @transform_3, window_bounds = array<i64: 1, 32>}, {pipeline_mode = #tpu.pipeline_mode<synchronous>, transform_indices = @transform_4, window_bounds = array<i64: 2, 32, 96>}, {pipeline_mode = #tpu.pipeline_mode<synchronous>, transform_indices = @transform_5, window_bounds = array<i64: 2, 1, 96>}, {pipeline_mode = #tpu.pipeline_mode<synchronous>, transform_indices = @transform_6, window_bounds = array<i64: 2, 32, 32>}, {pipeline_mode = #tpu.pipeline_mode<synchronous>, transform_indices = @transform_7, window_bounds = array<i64: 2, 1, 32>}, {pipeline_mode = #tpu.pipeline_mode<synchronous>, transform_indices = @transform_8, window_bounds = array<i64: 2, 1, 32>}, {pipeline_mode = #tpu.pipeline_mode<synchronous>, transform_indices = @transform_9, window_bounds = array<i64: 2, 1, 32>}, {pipeline_mode = #tpu.pipeline_mode<synchronous>, transform_indices = @transform_10, window_bounds = array<i64: 2, 32, 64>}, {pipeline_mode = #tpu.pipeline_mode<synchronous>, transform_indices = @transform_11, window_bounds = array<i64: 2, 1, 64>}, {pipeline_mode = #tpu.pipeline_mode<synchronous>, transform_indices = @transform_12, window_bounds = array<i64: 2, 64, 32>}, {pipeline_mode = #tpu.pipeline_mode<synchronous>, transform_indices = @transform_13, window_bounds = array<i64: 2, 1, 32>}, {pipeline_mode = #tpu.pipeline_mode<synchronous>, transform_indices = @transform_14, window_bounds = array<i64: 2, 1, 32>}, {pipeline_mode = #tpu.pipeline_mode<synchronous>, transform_indices = @transform_15, window_bounds = array<i64: 2, 1, 32>}, {pipeline_mode = #tpu.pipeline_mode<synchronous>, transform_indices = @transform_16, window_bounds = array<i64: 32, 128>}, {pipeline_mode = #tpu.pipeline_mode<synchronous>, transform_indices = @transform_17, window_bounds = array<i64: 1, 128>}, {transform_indices = @transform_18, window_bounds = array<i64: 1, 1, 128>}]} {
    %c0 = arith.constant 0 : index
    %c0_0 = arith.constant 0 : index
    %c0_1 = arith.constant 0 : index
    %0 = vector.load %arg1[%c0, %c0_0, %c0_1] : memref<1x8x32xf32, #tpu.memory_space<vmem>>, vector<1x8x32xf32>
    %1 = vector.shape_cast %0 : vector<1x8x32xf32> to vector<8x32xf32>
    %c0_2 = arith.constant 0 : index
    %c0_3 = arith.constant 0 : index
    %2 = vector.load %arg3[%c0_2, %c0_3] : memref<1x32xf32, #tpu.memory_space<vmem>>, vector<1x32xf32>
    %c0_4 = arith.constant 0 : index
    %c0_5 = arith.constant 0 : index
    %3 = vector.load %arg4[%c0_4, %c0_5] : memref<1x32xf32, #tpu.memory_space<vmem>>, vector<1x32xf32>
    %cst = arith.constant dense<0.000000e+00> : vector<8xf32>
    %4 = vector.multi_reduction <add>, %1, %cst [1] : vector<8x32xf32> to vector<8xf32>
    %5 = vector.shape_cast %4 : vector<8xf32> to vector<8x1xf32>
    %cst_6 = arith.constant 3.200000e+01 : f32
    %6 = vector.broadcast %cst_6 : f32 to vector<8x1xf32>
    %7 = arith.divf %5, %6 : vector<8x1xf32>
    %8 = vector.broadcast %7 : vector<8x1xf32> to vector<8x32xf32>
    %9 = arith.subf %1, %8 : vector<8x32xf32>
    %10 = arith.mulf %9, %9 : vector<8x32xf32>
    %cst_7 = arith.constant dense<0.000000e+00> : vector<8xf32>
    %11 = vector.multi_reduction <add>, %10, %cst_7 [1] : vector<8x32xf32> to vector<8xf32>
    %12 = vector.shape_cast %11 : vector<8xf32> to vector<8x1xf32>
    %cst_8 = arith.constant 3.200000e+01 : f32
    %13 = vector.broadcast %cst_8 : f32 to vector<8x1xf32>
    %14 = arith.divf %12, %13 : vector<8x1xf32>
    %15 = vector.broadcast %7 : vector<8x1xf32> to vector<8x32xf32>
    %16 = arith.subf %1, %15 : vector<8x32xf32>
    %cst_9 = arith.constant 9.99999974E-6 : f32
    %17 = vector.broadcast %cst_9 : f32 to vector<8x1xf32>
    %18 = arith.addf %14, %17 : vector<8x1xf32>
    %19 = math.rsqrt %18 : vector<8x1xf32>
    %20 = vector.broadcast %19 : vector<8x1xf32> to vector<8x32xf32>
    %21 = arith.mulf %16, %20 : vector<8x32xf32>
    %22 = vector.broadcast %2 : vector<1x32xf32> to vector<8x32xf32>
    %23 = arith.mulf %21, %22 : vector<8x32xf32>
    %24 = vector.broadcast %3 : vector<1x32xf32> to vector<8x32xf32>
    %25 = arith.addf %23, %24 : vector<8x32xf32>
    %c0_10 = arith.constant 0 : index
    %c0_11 = arith.constant 0 : index
    %c0_12 = arith.constant 0 : index
    %26 = vector.load %arg2[%c0_10, %c0_11, %c0_12] : memref<1x1x8xf32, #tpu.memory_space<vmem>>, vector<1x1x8xf32>
    %27 = vector.shape_cast %26 : vector<1x1x8xf32> to vector<1x8xf32>
    %cst_13 = arith.constant 1.000000e+00 : f32
    %28 = vector.broadcast %cst_13 : f32 to vector<1x8xf32>
    %29 = arith.subf %28, %27 : vector<1x8xf32>
    %cst_14 = arith.constant -1.000000e+09 : f32
    %30 = vector.broadcast %cst_14 : f32 to vector<1x8xf32>
    %31 = arith.mulf %29, %30 : vector<1x8xf32>
    %c0_15 = arith.constant 0 : index
    %c0_16 = arith.constant 0 : index
    %c0_17 = arith.constant 0 : index
    %32 = vector.load %arg5[%c0_15, %c0_16, %c0_17] : memref<2x32x96xf32, #tpu.memory_space<vmem>>, vector<1x32x96xf32>
    %33 = vector.shape_cast %32 : vector<1x32x96xf32> to vector<32x96xf32>
    %cst_18 = arith.constant dense<0.000000e+00> : vector<8x96xf32>
    %34 = tpu.matmul %25, %33, %cst_18 {dimension_numbers = #tpu.dot_dimension_numbers<[1], [0], [0], [1], [0, 0, 1, 1], [], []>} : vector<8x32xf32>, vector<32x96xf32>, vector<8x96xf32> -> vector<8x96xf32>
    %c0_19 = arith.constant 0 : index
    %c0_20 = arith.constant 0 : index
    %c0_21 = arith.constant 0 : index
    %35 = vector.load %arg6[%c0_19, %c0_20, %c0_21] : memref<2x1x96xf32, #tpu.memory_space<vmem>>, vector<1x1x96xf32>
    %36 = vector.shape_cast %35 : vector<1x1x96xf32> to vector<1x96xf32>
    %37 = vector.broadcast %36 : vector<1x96xf32> to vector<8x96xf32>
    %38 = arith.addf %34, %37 : vector<8x96xf32>
    %39 = vector.extract_strided_slice %38 {offsets = [0, 0], sizes = [8, 8], strides = [1, 1]} : vector<8x96xf32> to vector<8x8xf32>
    %40 = vector.extract_strided_slice %38 {offsets = [0, 32], sizes = [8, 8], strides = [1, 1]} : vector<8x96xf32> to vector<8x8xf32>
    %41 = vector.extract_strided_slice %38 {offsets = [0, 64], sizes = [8, 8], strides = [1, 1]} : vector<8x96xf32> to vector<8x8xf32>
    %42 = tpu.transpose %40, [1, 0] : vector<8x8xf32> -> vector<8x8xf32>
    %cst_22 = arith.constant dense<0.000000e+00> : vector<8x8xf32>
    %43 = tpu.matmul %39, %42, %cst_22 {dimension_numbers = #tpu.dot_dimension_numbers<[1], [0], [0], [1], [0, 0, 1, 1], [], []>} : vector<8x8xf32>, vector<8x8xf32>, vector<8x8xf32> -> vector<8x8xf32>
    %cst_23 = arith.constant 0.353553385 : f32
    %44 = vector.broadcast %cst_23 : f32 to vector<8x8xf32>
    %45 = arith.mulf %43, %44 : vector<8x8xf32>
    %46 = vector.broadcast %31 : vector<1x8xf32> to vector<8x8xf32>
    %47 = arith.addf %45, %46 : vector<8x8xf32>
    %cst_24 = arith.constant dense<0xFF800000> : vector<8xf32>
    %48 = vector.multi_reduction <maximumf>, %47, %cst_24 [1] : vector<8x8xf32> to vector<8xf32>
    %49 = vector.shape_cast %48 : vector<8xf32> to vector<8x1xf32>
    %50 = vector.broadcast %49 : vector<8x1xf32> to vector<8x8xf32>
    %51 = arith.subf %47, %50 : vector<8x8xf32>
    %52 = math.exp %51 : vector<8x8xf32>
    %cst_25 = arith.constant dense<0.000000e+00> : vector<8xf32>
    %53 = vector.multi_reduction <add>, %52, %cst_25 [1] : vector<8x8xf32> to vector<8xf32>
    %54 = vector.shape_cast %53 : vector<8xf32> to vector<8x1xf32>
    %55 = tpu.reciprocal %54 {approx = true} : vector<8x1xf32> -> vector<8x1xf32>
    %56 = vector.broadcast %55 : vector<8x1xf32> to vector<8x8xf32>
    %57 = arith.mulf %52, %56 : vector<8x8xf32>
    %cst_26 = arith.constant dense<0.000000e+00> : vector<8x8xf32>
    %58 = tpu.matmul %57, %41, %cst_26 {dimension_numbers = #tpu.dot_dimension_numbers<[1], [0], [0], [1], [0, 0, 1, 1], [], []>} : vector<8x8xf32>, vector<8x8xf32>, vector<8x8xf32> -> vector<8x8xf32>
    %59 = vector.extract_strided_slice %38 {offsets = [0, 8], sizes = [8, 8], strides = [1, 1]} : vector<8x96xf32> to vector<8x8xf32>
    %60 = vector.extract_strided_slice %38 {offsets = [0, 40], sizes = [8, 8], strides = [1, 1]} : vector<8x96xf32> to vector<8x8xf32>
    %61 = vector.extract_strided_slice %38 {offsets = [0, 72], sizes = [8, 8], strides = [1, 1]} : vector<8x96xf32> to vector<8x8xf32>
    %62 = tpu.transpose %60, [1, 0] : vector<8x8xf32> -> vector<8x8xf32>
    %cst_27 = arith.constant dense<0.000000e+00> : vector<8x8xf32>
    %63 = tpu.matmul %59, %62, %cst_27 {dimension_numbers = #tpu.dot_dimension_numbers<[1], [0], [0], [1], [0, 0, 1, 1], [], []>} : vector<8x8xf32>, vector<8x8xf32>, vector<8x8xf32> -> vector<8x8xf32>
    %cst_28 = arith.constant 0.353553385 : f32
    %64 = vector.broadcast %cst_28 : f32 to vector<8x8xf32>
    %65 = arith.mulf %63, %64 : vector<8x8xf32>
    %66 = vector.broadcast %31 : vector<1x8xf32> to vector<8x8xf32>
    %67 = arith.addf %65, %66 : vector<8x8xf32>
    %cst_29 = arith.constant dense<0xFF800000> : vector<8xf32>
    %68 = vector.multi_reduction <maximumf>, %67, %cst_29 [1] : vector<8x8xf32> to vector<8xf32>
    %69 = vector.shape_cast %68 : vector<8xf32> to vector<8x1xf32>
    %70 = vector.broadcast %69 : vector<8x1xf32> to vector<8x8xf32>
    %71 = arith.subf %67, %70 : vector<8x8xf32>
    %72 = math.exp %71 : vector<8x8xf32>
    %cst_30 = arith.constant dense<0.000000e+00> : vector<8xf32>
    %73 = vector.multi_reduction <add>, %72, %cst_30 [1] : vector<8x8xf32> to vector<8xf32>
    %74 = vector.shape_cast %73 : vector<8xf32> to vector<8x1xf32>
    %75 = tpu.reciprocal %74 {approx = true} : vector<8x1xf32> -> vector<8x1xf32>
    %76 = vector.broadcast %75 : vector<8x1xf32> to vector<8x8xf32>
    %77 = arith.mulf %72, %76 : vector<8x8xf32>
    %cst_31 = arith.constant dense<0.000000e+00> : vector<8x8xf32>
    %78 = tpu.matmul %77, %61, %cst_31 {dimension_numbers = #tpu.dot_dimension_numbers<[1], [0], [0], [1], [0, 0, 1, 1], [], []>} : vector<8x8xf32>, vector<8x8xf32>, vector<8x8xf32> -> vector<8x8xf32>
    %79 = vector.extract_strided_slice %38 {offsets = [0, 16], sizes = [8, 8], strides = [1, 1]} : vector<8x96xf32> to vector<8x8xf32>
    %80 = vector.extract_strided_slice %38 {offsets = [0, 48], sizes = [8, 8], strides = [1, 1]} : vector<8x96xf32> to vector<8x8xf32>
    %81 = vector.extract_strided_slice %38 {offsets = [0, 80], sizes = [8, 8], strides = [1, 1]} : vector<8x96xf32> to vector<8x8xf32>
    %82 = tpu.transpose %80, [1, 0] : vector<8x8xf32> -> vector<8x8xf32>
    %cst_32 = arith.constant dense<0.000000e+00> : vector<8x8xf32>
    %83 = tpu.matmul %79, %82, %cst_32 {dimension_numbers = #tpu.dot_dimension_numbers<[1], [0], [0], [1], [0, 0, 1, 1], [], []>} : vector<8x8xf32>, vector<8x8xf32>, vector<8x8xf32> -> vector<8x8xf32>
    %cst_33 = arith.constant 0.353553385 : f32
    %84 = vector.broadcast %cst_33 : f32 to vector<8x8xf32>
    %85 = arith.mulf %83, %84 : vector<8x8xf32>
    %86 = vector.broadcast %31 : vector<1x8xf32> to vector<8x8xf32>
    %87 = arith.addf %85, %86 : vector<8x8xf32>
    %cst_34 = arith.constant dense<0xFF800000> : vector<8xf32>
    %88 = vector.multi_reduction <maximumf>, %87, %cst_34 [1] : vector<8x8xf32> to vector<8xf32>
    %89 = vector.shape_cast %88 : vector<8xf32> to vector<8x1xf32>
    %90 = vector.broadcast %89 : vector<8x1xf32> to vector<8x8xf32>
    %91 = arith.subf %87, %90 : vector<8x8xf32>
    %92 = math.exp %91 : vector<8x8xf32>
    %cst_35 = arith.constant dense<0.000000e+00> : vector<8xf32>
    %93 = vector.multi_reduction <add>, %92, %cst_35 [1] : vector<8x8xf32> to vector<8xf32>
    %94 = vector.shape_cast %93 : vector<8xf32> to vector<8x1xf32>
    %95 = tpu.reciprocal %94 {approx = true} : vector<8x1xf32> -> vector<8x1xf32>
    %96 = vector.broadcast %95 : vector<8x1xf32> to vector<8x8xf32>
    %97 = arith.mulf %92, %96 : vector<8x8xf32>
    %cst_36 = arith.constant dense<0.000000e+00> : vector<8x8xf32>
    %98 = tpu.matmul %97, %81, %cst_36 {dimension_numbers = #tpu.dot_dimension_numbers<[1], [0], [0], [1], [0, 0, 1, 1], [], []>} : vector<8x8xf32>, vector<8x8xf32>, vector<8x8xf32> -> vector<8x8xf32>
    %99 = vector.extract_strided_slice %38 {offsets = [0, 24], sizes = [8, 8], strides = [1, 1]} : vector<8x96xf32> to vector<8x8xf32>
    %100 = vector.extract_strided_slice %38 {offsets = [0, 56], sizes = [8, 8], strides = [1, 1]} : vector<8x96xf32> to vector<8x8xf32>
    %101 = vector.extract_strided_slice %38 {offsets = [0, 88], sizes = [8, 8], strides = [1, 1]} : vector<8x96xf32> to vector<8x8xf32>
    %102 = tpu.transpose %100, [1, 0] : vector<8x8xf32> -> vector<8x8xf32>
    %cst_37 = arith.constant dense<0.000000e+00> : vector<8x8xf32>
    %103 = tpu.matmul %99, %102, %cst_37 {dimension_numbers = #tpu.dot_dimension_numbers<[1], [0], [0], [1], [0, 0, 1, 1], [], []>} : vector<8x8xf32>, vector<8x8xf32>, vector<8x8xf32> -> vector<8x8xf32>
    %cst_38 = arith.constant 0.353553385 : f32
    %104 = vector.broadcast %cst_38 : f32 to vector<8x8xf32>
    %105 = arith.mulf %103, %104 : vector<8x8xf32>
    %106 = vector.broadcast %31 : vector<1x8xf32> to vector<8x8xf32>
    %107 = arith.addf %105, %106 : vector<8x8xf32>
    %cst_39 = arith.constant dense<0xFF800000> : vector<8xf32>
    %108 = vector.multi_reduction <maximumf>, %107, %cst_39 [1] : vector<8x8xf32> to vector<8xf32>
    %109 = vector.shape_cast %108 : vector<8xf32> to vector<8x1xf32>
    %110 = vector.broadcast %109 : vector<8x1xf32> to vector<8x8xf32>
    %111 = arith.subf %107, %110 : vector<8x8xf32>
    %112 = math.exp %111 : vector<8x8xf32>
    %cst_40 = arith.constant dense<0.000000e+00> : vector<8xf32>
    %113 = vector.multi_reduction <add>, %112, %cst_40 [1] : vector<8x8xf32> to vector<8xf32>
    %114 = vector.shape_cast %113 : vector<8xf32> to vector<8x1xf32>
    %115 = tpu.reciprocal %114 {approx = true} : vector<8x1xf32> -> vector<8x1xf32>
    %116 = vector.broadcast %115 : vector<8x1xf32> to vector<8x8xf32>
    %117 = arith.mulf %112, %116 : vector<8x8xf32>
    %cst_41 = arith.constant dense<0.000000e+00> : vector<8x8xf32>
    %118 = tpu.matmul %117, %101, %cst_41 {dimension_numbers = #tpu.dot_dimension_numbers<[1], [0], [0], [1], [0, 0, 1, 1], [], []>} : vector<8x8xf32>, vector<8x8xf32>, vector<8x8xf32> -> vector<8x8xf32>
    %119 = tpu.concatenate %58, %78, %98, %118 in 1 : vector<8x8xf32>, vector<8x8xf32>, vector<8x8xf32>, vector<8x8xf32> -> vector<8x32xf32>
    %c0_42 = arith.constant 0 : index
    %c0_43 = arith.constant 0 : index
    %c0_44 = arith.constant 0 : index
    %120 = vector.load %arg7[%c0_42, %c0_43, %c0_44] : memref<2x32x32xf32, #tpu.memory_space<vmem>>, vector<1x32x32xf32>
    %121 = vector.shape_cast %120 : vector<1x32x32xf32> to vector<32x32xf32>
    %cst_45 = arith.constant dense<0.000000e+00> : vector<8x32xf32>
    %122 = tpu.matmul %119, %121, %cst_45 {dimension_numbers = #tpu.dot_dimension_numbers<[1], [0], [0], [1], [0, 0, 1, 1], [], []>} : vector<8x32xf32>, vector<32x32xf32>, vector<8x32xf32> -> vector<8x32xf32>
    %c0_46 = arith.constant 0 : index
    %c0_47 = arith.constant 0 : index
    %c0_48 = arith.constant 0 : index
    %123 = vector.load %arg8[%c0_46, %c0_47, %c0_48] : memref<2x1x32xf32, #tpu.memory_space<vmem>>, vector<1x1x32xf32>
    %124 = vector.shape_cast %123 : vector<1x1x32xf32> to vector<1x32xf32>
    %125 = vector.broadcast %124 : vector<1x32xf32> to vector<8x32xf32>
    %126 = arith.addf %122, %125 : vector<8x32xf32>
    %127 = arith.addf %25, %126 : vector<8x32xf32>
    %c0_49 = arith.constant 0 : index
    %c0_50 = arith.constant 0 : index
    %c0_51 = arith.constant 0 : index
    %128 = vector.load %arg9[%c0_49, %c0_50, %c0_51] : memref<2x1x32xf32, #tpu.memory_space<vmem>>, vector<1x1x32xf32>
    %129 = vector.shape_cast %128 : vector<1x1x32xf32> to vector<1x32xf32>
    %c0_52 = arith.constant 0 : index
    %c0_53 = arith.constant 0 : index
    %c0_54 = arith.constant 0 : index
    %130 = vector.load %arg10[%c0_52, %c0_53, %c0_54] : memref<2x1x32xf32, #tpu.memory_space<vmem>>, vector<1x1x32xf32>
    %131 = vector.shape_cast %130 : vector<1x1x32xf32> to vector<1x32xf32>
    %cst_55 = arith.constant dense<0.000000e+00> : vector<8xf32>
    %132 = vector.multi_reduction <add>, %127, %cst_55 [1] : vector<8x32xf32> to vector<8xf32>
    %133 = vector.shape_cast %132 : vector<8xf32> to vector<8x1xf32>
    %cst_56 = arith.constant 3.200000e+01 : f32
    %134 = vector.broadcast %cst_56 : f32 to vector<8x1xf32>
    %135 = arith.divf %133, %134 : vector<8x1xf32>
    %136 = vector.broadcast %135 : vector<8x1xf32> to vector<8x32xf32>
    %137 = arith.subf %127, %136 : vector<8x32xf32>
    %138 = arith.mulf %137, %137 : vector<8x32xf32>
    %cst_57 = arith.constant dense<0.000000e+00> : vector<8xf32>
    %139 = vector.multi_reduction <add>, %138, %cst_57 [1] : vector<8x32xf32> to vector<8xf32>
    %140 = vector.shape_cast %139 : vector<8xf32> to vector<8x1xf32>
    %cst_58 = arith.constant 3.200000e+01 : f32
    %141 = vector.broadcast %cst_58 : f32 to vector<8x1xf32>
    %142 = arith.divf %140, %141 : vector<8x1xf32>
    %143 = vector.broadcast %135 : vector<8x1xf32> to vector<8x32xf32>
    %144 = arith.subf %127, %143 : vector<8x32xf32>
    %cst_59 = arith.constant 9.99999974E-6 : f32
    %145 = vector.broadcast %cst_59 : f32 to vector<8x1xf32>
    %146 = arith.addf %142, %145 : vector<8x1xf32>
    %147 = math.rsqrt %146 : vector<8x1xf32>
    %148 = vector.broadcast %147 : vector<8x1xf32> to vector<8x32xf32>
    %149 = arith.mulf %144, %148 : vector<8x32xf32>
    %150 = vector.broadcast %129 : vector<1x32xf32> to vector<8x32xf32>
    %151 = arith.mulf %149, %150 : vector<8x32xf32>
    %152 = vector.broadcast %131 : vector<1x32xf32> to vector<8x32xf32>
    %153 = arith.addf %151, %152 : vector<8x32xf32>
    %c0_60 = arith.constant 0 : index
    %c0_61 = arith.constant 0 : index
    %c0_62 = arith.constant 0 : index
    %154 = vector.load %arg11[%c0_60, %c0_61, %c0_62] : memref<2x32x64xf32, #tpu.memory_space<vmem>>, vector<1x32x64xf32>
    %155 = vector.shape_cast %154 : vector<1x32x64xf32> to vector<32x64xf32>
    %cst_63 = arith.constant dense<0.000000e+00> : vector<8x64xf32>
    %156 = tpu.matmul %153, %155, %cst_63 {dimension_numbers = #tpu.dot_dimension_numbers<[1], [0], [0], [1], [0, 0, 1, 1], [], []>} : vector<8x32xf32>, vector<32x64xf32>, vector<8x64xf32> -> vector<8x64xf32>
    %c0_64 = arith.constant 0 : index
    %c0_65 = arith.constant 0 : index
    %c0_66 = arith.constant 0 : index
    %157 = vector.load %arg12[%c0_64, %c0_65, %c0_66] : memref<2x1x64xf32, #tpu.memory_space<vmem>>, vector<1x1x64xf32>
    %158 = vector.shape_cast %157 : vector<1x1x64xf32> to vector<1x64xf32>
    %159 = vector.broadcast %158 : vector<1x64xf32> to vector<8x64xf32>
    %160 = arith.addf %156, %159 : vector<8x64xf32>
    %cst_67 = arith.constant 5.000000e-01 : f32
    %161 = vector.broadcast %cst_67 : f32 to vector<8x64xf32>
    %162 = arith.mulf %161, %160 : vector<8x64xf32>
    %cst_68 = arith.constant 4.471500e-02 : f32
    %163 = vector.broadcast %cst_68 : f32 to vector<8x64xf32>
    %164 = arith.mulf %163, %160 : vector<8x64xf32>
    %165 = arith.mulf %164, %160 : vector<8x64xf32>
    %166 = arith.mulf %165, %160 : vector<8x64xf32>
    %167 = arith.addf %160, %166 : vector<8x64xf32>
    %cst_69 = arith.constant 0.797884583 : f32
    %168 = vector.broadcast %cst_69 : f32 to vector<8x64xf32>
    %169 = arith.mulf %168, %167 : vector<8x64xf32>
    %170 = math.tanh %169 : vector<8x64xf32>
    %cst_70 = arith.constant 1.000000e+00 : f32
    %171 = vector.broadcast %cst_70 : f32 to vector<8x64xf32>
    %172 = arith.addf %171, %170 : vector<8x64xf32>
    %173 = arith.mulf %162, %172 : vector<8x64xf32>
    %c0_71 = arith.constant 0 : index
    %c0_72 = arith.constant 0 : index
    %c0_73 = arith.constant 0 : index
    %174 = vector.load %arg13[%c0_71, %c0_72, %c0_73] : memref<2x64x32xf32, #tpu.memory_space<vmem>>, vector<1x64x32xf32>
    %175 = vector.shape_cast %174 : vector<1x64x32xf32> to vector<64x32xf32>
    %cst_74 = arith.constant dense<0.000000e+00> : vector<8x32xf32>
    %176 = tpu.matmul %173, %175, %cst_74 {dimension_numbers = #tpu.dot_dimension_numbers<[1], [0], [0], [1], [0, 0, 1, 1], [], []>} : vector<8x64xf32>, vector<64x32xf32>, vector<8x32xf32> -> vector<8x32xf32>
    %c0_75 = arith.constant 0 : index
    %c0_76 = arith.constant 0 : index
    %c0_77 = arith.constant 0 : index
    %177 = vector.load %arg14[%c0_75, %c0_76, %c0_77] : memref<2x1x32xf32, #tpu.memory_space<vmem>>, vector<1x1x32xf32>
    %178 = vector.shape_cast %177 : vector<1x1x32xf32> to vector<1x32xf32>
    %179 = vector.broadcast %178 : vector<1x32xf32> to vector<8x32xf32>
    %180 = arith.addf %176, %179 : vector<8x32xf32>
    %181 = arith.addf %153, %180 : vector<8x32xf32>
    %c0_78 = arith.constant 0 : index
    %c0_79 = arith.constant 0 : index
    %c0_80 = arith.constant 0 : index
    %182 = vector.load %arg15[%c0_78, %c0_79, %c0_80] : memref<2x1x32xf32, #tpu.memory_space<vmem>>, vector<1x1x32xf32>
    %183 = vector.shape_cast %182 : vector<1x1x32xf32> to vector<1x32xf32>
    %c0_81 = arith.constant 0 : index
    %c0_82 = arith.constant 0 : index
    %c0_83 = arith.constant 0 : index
    %184 = vector.load %arg16[%c0_81, %c0_82, %c0_83] : memref<2x1x32xf32, #tpu.memory_space<vmem>>, vector<1x1x32xf32>
    %185 = vector.shape_cast %184 : vector<1x1x32xf32> to vector<1x32xf32>
    %cst_84 = arith.constant dense<0.000000e+00> : vector<8xf32>
    %186 = vector.multi_reduction <add>, %181, %cst_84 [1] : vector<8x32xf32> to vector<8xf32>
    %187 = vector.shape_cast %186 : vector<8xf32> to vector<8x1xf32>
    %cst_85 = arith.constant 3.200000e+01 : f32
    %188 = vector.broadcast %cst_85 : f32 to vector<8x1xf32>
    %189 = arith.divf %187, %188 : vector<8x1xf32>
    %190 = vector.broadcast %189 : vector<8x1xf32> to vector<8x32xf32>
    %191 = arith.subf %181, %190 : vector<8x32xf32>
    %192 = arith.mulf %191, %191 : vector<8x32xf32>
    %cst_86 = arith.constant dense<0.000000e+00> : vector<8xf32>
    %193 = vector.multi_reduction <add>, %192, %cst_86 [1] : vector<8x32xf32> to vector<8xf32>
    %194 = vector.shape_cast %193 : vector<8xf32> to vector<8x1xf32>
    %cst_87 = arith.constant 3.200000e+01 : f32
    %195 = vector.broadcast %cst_87 : f32 to vector<8x1xf32>
    %196 = arith.divf %194, %195 : vector<8x1xf32>
    %197 = vector.broadcast %189 : vector<8x1xf32> to vector<8x32xf32>
    %198 = arith.subf %181, %197 : vector<8x32xf32>
    %cst_88 = arith.constant 9.99999974E-6 : f32
    %199 = vector.broadcast %cst_88 : f32 to vector<8x1xf32>
    %200 = arith.addf %196, %199 : vector<8x1xf32>
    %201 = math.rsqrt %200 : vector<8x1xf32>
    %202 = vector.broadcast %201 : vector<8x1xf32> to vector<8x32xf32>
    %203 = arith.mulf %198, %202 : vector<8x32xf32>
    %204 = vector.broadcast %183 : vector<1x32xf32> to vector<8x32xf32>
    %205 = arith.mulf %203, %204 : vector<8x32xf32>
    %206 = vector.broadcast %185 : vector<1x32xf32> to vector<8x32xf32>
    %207 = arith.addf %205, %206 : vector<8x32xf32>
    %c1 = arith.constant 1 : index
    %c0_89 = arith.constant 0 : index
    %c0_90 = arith.constant 0 : index
    %208 = vector.load %arg5[%c1, %c0_89, %c0_90] : memref<2x32x96xf32, #tpu.memory_space<vmem>>, vector<1x32x96xf32>
    %209 = vector.shape_cast %208 : vector<1x32x96xf32> to vector<32x96xf32>
    %cst_91 = arith.constant dense<0.000000e+00> : vector<8x96xf32>
    %210 = tpu.matmul %207, %209, %cst_91 {dimension_numbers = #tpu.dot_dimension_numbers<[1], [0], [0], [1], [0, 0, 1, 1], [], []>} : vector<8x32xf32>, vector<32x96xf32>, vector<8x96xf32> -> vector<8x96xf32>
    %c1_92 = arith.constant 1 : index
    %c0_93 = arith.constant 0 : index
    %c0_94 = arith.constant 0 : index
    %211 = vector.load %arg6[%c1_92, %c0_93, %c0_94] : memref<2x1x96xf32, #tpu.memory_space<vmem>>, vector<1x1x96xf32>
    %212 = vector.shape_cast %211 : vector<1x1x96xf32> to vector<1x96xf32>
    %213 = vector.broadcast %212 : vector<1x96xf32> to vector<8x96xf32>
    %214 = arith.addf %210, %213 : vector<8x96xf32>
    %215 = vector.extract_strided_slice %214 {offsets = [0, 0], sizes = [8, 8], strides = [1, 1]} : vector<8x96xf32> to vector<8x8xf32>
    %216 = vector.extract_strided_slice %214 {offsets = [0, 32], sizes = [8, 8], strides = [1, 1]} : vector<8x96xf32> to vector<8x8xf32>
    %217 = vector.extract_strided_slice %214 {offsets = [0, 64], sizes = [8, 8], strides = [1, 1]} : vector<8x96xf32> to vector<8x8xf32>
    %218 = tpu.transpose %216, [1, 0] : vector<8x8xf32> -> vector<8x8xf32>
    %cst_95 = arith.constant dense<0.000000e+00> : vector<8x8xf32>
    %219 = tpu.matmul %215, %218, %cst_95 {dimension_numbers = #tpu.dot_dimension_numbers<[1], [0], [0], [1], [0, 0, 1, 1], [], []>} : vector<8x8xf32>, vector<8x8xf32>, vector<8x8xf32> -> vector<8x8xf32>
    %cst_96 = arith.constant 0.353553385 : f32
    %220 = vector.broadcast %cst_96 : f32 to vector<8x8xf32>
    %221 = arith.mulf %219, %220 : vector<8x8xf32>
    %222 = vector.broadcast %31 : vector<1x8xf32> to vector<8x8xf32>
    %223 = arith.addf %221, %222 : vector<8x8xf32>
    %cst_97 = arith.constant dense<0xFF800000> : vector<8xf32>
    %224 = vector.multi_reduction <maximumf>, %223, %cst_97 [1] : vector<8x8xf32> to vector<8xf32>
    %225 = vector.shape_cast %224 : vector<8xf32> to vector<8x1xf32>
    %226 = vector.broadcast %225 : vector<8x1xf32> to vector<8x8xf32>
    %227 = arith.subf %223, %226 : vector<8x8xf32>
    %228 = math.exp %227 : vector<8x8xf32>
    %cst_98 = arith.constant dense<0.000000e+00> : vector<8xf32>
    %229 = vector.multi_reduction <add>, %228, %cst_98 [1] : vector<8x8xf32> to vector<8xf32>
    %230 = vector.shape_cast %229 : vector<8xf32> to vector<8x1xf32>
    %231 = tpu.reciprocal %230 {approx = true} : vector<8x1xf32> -> vector<8x1xf32>
    %232 = vector.broadcast %231 : vector<8x1xf32> to vector<8x8xf32>
    %233 = arith.mulf %228, %232 : vector<8x8xf32>
    %cst_99 = arith.constant dense<0.000000e+00> : vector<8x8xf32>
    %234 = tpu.matmul %233, %217, %cst_99 {dimension_numbers = #tpu.dot_dimension_numbers<[1], [0], [0], [1], [0, 0, 1, 1], [], []>} : vector<8x8xf32>, vector<8x8xf32>, vector<8x8xf32> -> vector<8x8xf32>
    %235 = vector.extract_strided_slice %214 {offsets = [0, 8], sizes = [8, 8], strides = [1, 1]} : vector<8x96xf32> to vector<8x8xf32>
    %236 = vector.extract_strided_slice %214 {offsets = [0, 40], sizes = [8, 8], strides = [1, 1]} : vector<8x96xf32> to vector<8x8xf32>
    %237 = vector.extract_strided_slice %214 {offsets = [0, 72], sizes = [8, 8], strides = [1, 1]} : vector<8x96xf32> to vector<8x8xf32>
    %238 = tpu.transpose %236, [1, 0] : vector<8x8xf32> -> vector<8x8xf32>
    %cst_100 = arith.constant dense<0.000000e+00> : vector<8x8xf32>
    %239 = tpu.matmul %235, %238, %cst_100 {dimension_numbers = #tpu.dot_dimension_numbers<[1], [0], [0], [1], [0, 0, 1, 1], [], []>} : vector<8x8xf32>, vector<8x8xf32>, vector<8x8xf32> -> vector<8x8xf32>
    %cst_101 = arith.constant 0.353553385 : f32
    %240 = vector.broadcast %cst_101 : f32 to vector<8x8xf32>
    %241 = arith.mulf %239, %240 : vector<8x8xf32>
    %242 = vector.broadcast %31 : vector<1x8xf32> to vector<8x8xf32>
    %243 = arith.addf %241, %242 : vector<8x8xf32>
    %cst_102 = arith.constant dense<0xFF800000> : vector<8xf32>
    %244 = vector.multi_reduction <maximumf>, %243, %cst_102 [1] : vector<8x8xf32> to vector<8xf32>
    %245 = vector.shape_cast %244 : vector<8xf32> to vector<8x1xf32>
    %246 = vector.broadcast %245 : vector<8x1xf32> to vector<8x8xf32>
    %247 = arith.subf %243, %246 : vector<8x8xf32>
    %248 = math.exp %247 : vector<8x8xf32>
    %cst_103 = arith.constant dense<0.000000e+00> : vector<8xf32>
    %249 = vector.multi_reduction <add>, %248, %cst_103 [1] : vector<8x8xf32> to vector<8xf32>
    %250 = vector.shape_cast %249 : vector<8xf32> to vector<8x1xf32>
    %251 = tpu.reciprocal %250 {approx = true} : vector<8x1xf32> -> vector<8x1xf32>
    %252 = vector.broadcast %251 : vector<8x1xf32> to vector<8x8xf32>
    %253 = arith.mulf %248, %252 : vector<8x8xf32>
    %cst_104 = arith.constant dense<0.000000e+00> : vector<8x8xf32>
    %254 = tpu.matmul %253, %237, %cst_104 {dimension_numbers = #tpu.dot_dimension_numbers<[1], [0], [0], [1], [0, 0, 1, 1], [], []>} : vector<8x8xf32>, vector<8x8xf32>, vector<8x8xf32> -> vector<8x8xf32>
    %255 = vector.extract_strided_slice %214 {offsets = [0, 16], sizes = [8, 8], strides = [1, 1]} : vector<8x96xf32> to vector<8x8xf32>
    %256 = vector.extract_strided_slice %214 {offsets = [0, 48], sizes = [8, 8], strides = [1, 1]} : vector<8x96xf32> to vector<8x8xf32>
    %257 = vector.extract_strided_slice %214 {offsets = [0, 80], sizes = [8, 8], strides = [1, 1]} : vector<8x96xf32> to vector<8x8xf32>
    %258 = tpu.transpose %256, [1, 0] : vector<8x8xf32> -> vector<8x8xf32>
    %cst_105 = arith.constant dense<0.000000e+00> : vector<8x8xf32>
    %259 = tpu.matmul %255, %258, %cst_105 {dimension_numbers = #tpu.dot_dimension_numbers<[1], [0], [0], [1], [0, 0, 1, 1], [], []>} : vector<8x8xf32>, vector<8x8xf32>, vector<8x8xf32> -> vector<8x8xf32>
    %cst_106 = arith.constant 0.353553385 : f32
    %260 = vector.broadcast %cst_106 : f32 to vector<8x8xf32>
    %261 = arith.mulf %259, %260 : vector<8x8xf32>
    %262 = vector.broadcast %31 : vector<1x8xf32> to vector<8x8xf32>
    %263 = arith.addf %261, %262 : vector<8x8xf32>
    %cst_107 = arith.constant dense<0xFF800000> : vector<8xf32>
    %264 = vector.multi_reduction <maximumf>, %263, %cst_107 [1] : vector<8x8xf32> to vector<8xf32>
    %265 = vector.shape_cast %264 : vector<8xf32> to vector<8x1xf32>
    %266 = vector.broadcast %265 : vector<8x1xf32> to vector<8x8xf32>
    %267 = arith.subf %263, %266 : vector<8x8xf32>
    %268 = math.exp %267 : vector<8x8xf32>
    %cst_108 = arith.constant dense<0.000000e+00> : vector<8xf32>
    %269 = vector.multi_reduction <add>, %268, %cst_108 [1] : vector<8x8xf32> to vector<8xf32>
    %270 = vector.shape_cast %269 : vector<8xf32> to vector<8x1xf32>
    %271 = tpu.reciprocal %270 {approx = true} : vector<8x1xf32> -> vector<8x1xf32>
    %272 = vector.broadcast %271 : vector<8x1xf32> to vector<8x8xf32>
    %273 = arith.mulf %268, %272 : vector<8x8xf32>
    %cst_109 = arith.constant dense<0.000000e+00> : vector<8x8xf32>
    %274 = tpu.matmul %273, %257, %cst_109 {dimension_numbers = #tpu.dot_dimension_numbers<[1], [0], [0], [1], [0, 0, 1, 1], [], []>} : vector<8x8xf32>, vector<8x8xf32>, vector<8x8xf32> -> vector<8x8xf32>
    %275 = vector.extract_strided_slice %214 {offsets = [0, 24], sizes = [8, 8], strides = [1, 1]} : vector<8x96xf32> to vector<8x8xf32>
    %276 = vector.extract_strided_slice %214 {offsets = [0, 56], sizes = [8, 8], strides = [1, 1]} : vector<8x96xf32> to vector<8x8xf32>
    %277 = vector.extract_strided_slice %214 {offsets = [0, 88], sizes = [8, 8], strides = [1, 1]} : vector<8x96xf32> to vector<8x8xf32>
    %278 = tpu.transpose %276, [1, 0] : vector<8x8xf32> -> vector<8x8xf32>
    %cst_110 = arith.constant dense<0.000000e+00> : vector<8x8xf32>
    %279 = tpu.matmul %275, %278, %cst_110 {dimension_numbers = #tpu.dot_dimension_numbers<[1], [0], [0], [1], [0, 0, 1, 1], [], []>} : vector<8x8xf32>, vector<8x8xf32>, vector<8x8xf32> -> vector<8x8xf32>
    %cst_111 = arith.constant 0.353553385 : f32
    %280 = vector.broadcast %cst_111 : f32 to vector<8x8xf32>
    %281 = arith.mulf %279, %280 : vector<8x8xf32>
    %282 = vector.broadcast %31 : vector<1x8xf32> to vector<8x8xf32>
    %283 = arith.addf %281, %282 : vector<8x8xf32>
    %cst_112 = arith.constant dense<0xFF800000> : vector<8xf32>
    %284 = vector.multi_reduction <maximumf>, %283, %cst_112 [1] : vector<8x8xf32> to vector<8xf32>
    %285 = vector.shape_cast %284 : vector<8xf32> to vector<8x1xf32>
    %286 = vector.broadcast %285 : vector<8x1xf32> to vector<8x8xf32>
    %287 = arith.subf %283, %286 : vector<8x8xf32>
    %288 = math.exp %287 : vector<8x8xf32>
    %cst_113 = arith.constant dense<0.000000e+00> : vector<8xf32>
    %289 = vector.multi_reduction <add>, %288, %cst_113 [1] : vector<8x8xf32> to vector<8xf32>
    %290 = vector.shape_cast %289 : vector<8xf32> to vector<8x1xf32>
    %291 = tpu.reciprocal %290 {approx = true} : vector<8x1xf32> -> vector<8x1xf32>
    %292 = vector.broadcast %291 : vector<8x1xf32> to vector<8x8xf32>
    %293 = arith.mulf %288, %292 : vector<8x8xf32>
    %cst_114 = arith.constant dense<0.000000e+00> : vector<8x8xf32>
    %294 = tpu.matmul %293, %277, %cst_114 {dimension_numbers = #tpu.dot_dimension_numbers<[1], [0], [0], [1], [0, 0, 1, 1], [], []>} : vector<8x8xf32>, vector<8x8xf32>, vector<8x8xf32> -> vector<8x8xf32>
    %295 = tpu.concatenate %234, %254, %274, %294 in 1 : vector<8x8xf32>, vector<8x8xf32>, vector<8x8xf32>, vector<8x8xf32> -> vector<8x32xf32>
    %c1_115 = arith.constant 1 : index
    %c0_116 = arith.constant 0 : index
    %c0_117 = arith.constant 0 : index
    %296 = vector.load %arg7[%c1_115, %c0_116, %c0_117] : memref<2x32x32xf32, #tpu.memory_space<vmem>>, vector<1x32x32xf32>
    %297 = vector.shape_cast %296 : vector<1x32x32xf32> to vector<32x32xf32>
    %cst_118 = arith.constant dense<0.000000e+00> : vector<8x32xf32>
    %298 = tpu.matmul %295, %297, %cst_118 {dimension_numbers = #tpu.dot_dimension_numbers<[1], [0], [0], [1], [0, 0, 1, 1], [], []>} : vector<8x32xf32>, vector<32x32xf32>, vector<8x32xf32> -> vector<8x32xf32>
    %c1_119 = arith.constant 1 : index
    %c0_120 = arith.constant 0 : index
    %c0_121 = arith.constant 0 : index
    %299 = vector.load %arg8[%c1_119, %c0_120, %c0_121] : memref<2x1x32xf32, #tpu.memory_space<vmem>>, vector<1x1x32xf32>
    %300 = vector.shape_cast %299 : vector<1x1x32xf32> to vector<1x32xf32>
    %301 = vector.broadcast %300 : vector<1x32xf32> to vector<8x32xf32>
    %302 = arith.addf %298, %301 : vector<8x32xf32>
    %303 = arith.addf %207, %302 : vector<8x32xf32>
    %c1_122 = arith.constant 1 : index
    %c0_123 = arith.constant 0 : index
    %c0_124 = arith.constant 0 : index
    %304 = vector.load %arg9[%c1_122, %c0_123, %c0_124] : memref<2x1x32xf32, #tpu.memory_space<vmem>>, vector<1x1x32xf32>
    %305 = vector.shape_cast %304 : vector<1x1x32xf32> to vector<1x32xf32>
    %c1_125 = arith.constant 1 : index
    %c0_126 = arith.constant 0 : index
    %c0_127 = arith.constant 0 : index
    %306 = vector.load %arg10[%c1_125, %c0_126, %c0_127] : memref<2x1x32xf32, #tpu.memory_space<vmem>>, vector<1x1x32xf32>
    %307 = vector.shape_cast %306 : vector<1x1x32xf32> to vector<1x32xf32>
    %cst_128 = arith.constant dense<0.000000e+00> : vector<8xf32>
    %308 = vector.multi_reduction <add>, %303, %cst_128 [1] : vector<8x32xf32> to vector<8xf32>
    %309 = vector.shape_cast %308 : vector<8xf32> to vector<8x1xf32>
    %cst_129 = arith.constant 3.200000e+01 : f32
    %310 = vector.broadcast %cst_129 : f32 to vector<8x1xf32>
    %311 = arith.divf %309, %310 : vector<8x1xf32>
    %312 = vector.broadcast %311 : vector<8x1xf32> to vector<8x32xf32>
    %313 = arith.subf %303, %312 : vector<8x32xf32>
    %314 = arith.mulf %313, %313 : vector<8x32xf32>
    %cst_130 = arith.constant dense<0.000000e+00> : vector<8xf32>
    %315 = vector.multi_reduction <add>, %314, %cst_130 [1] : vector<8x32xf32> to vector<8xf32>
    %316 = vector.shape_cast %315 : vector<8xf32> to vector<8x1xf32>
    %cst_131 = arith.constant 3.200000e+01 : f32
    %317 = vector.broadcast %cst_131 : f32 to vector<8x1xf32>
    %318 = arith.divf %316, %317 : vector<8x1xf32>
    %319 = vector.broadcast %311 : vector<8x1xf32> to vector<8x32xf32>
    %320 = arith.subf %303, %319 : vector<8x32xf32>
    %cst_132 = arith.constant 9.99999974E-6 : f32
    %321 = vector.broadcast %cst_132 : f32 to vector<8x1xf32>
    %322 = arith.addf %318, %321 : vector<8x1xf32>
    %323 = math.rsqrt %322 : vector<8x1xf32>
    %324 = vector.broadcast %323 : vector<8x1xf32> to vector<8x32xf32>
    %325 = arith.mulf %320, %324 : vector<8x32xf32>
    %326 = vector.broadcast %305 : vector<1x32xf32> to vector<8x32xf32>
    %327 = arith.mulf %325, %326 : vector<8x32xf32>
    %328 = vector.broadcast %307 : vector<1x32xf32> to vector<8x32xf32>
    %329 = arith.addf %327, %328 : vector<8x32xf32>
    %c1_133 = arith.constant 1 : index
    %c0_134 = arith.constant 0 : index
    %c0_135 = arith.constant 0 : index
    %330 = vector.load %arg11[%c1_133, %c0_134, %c0_135] : memref<2x32x64xf32, #tpu.memory_space<vmem>>, vector<1x32x64xf32>
    %331 = vector.shape_cast %330 : vector<1x32x64xf32> to vector<32x64xf32>
    %cst_136 = arith.constant dense<0.000000e+00> : vector<8x64xf32>
    %332 = tpu.matmul %329, %331, %cst_136 {dimension_numbers = #tpu.dot_dimension_numbers<[1], [0], [0], [1], [0, 0, 1, 1], [], []>} : vector<8x32xf32>, vector<32x64xf32>, vector<8x64xf32> -> vector<8x64xf32>
    %c1_137 = arith.constant 1 : index
    %c0_138 = arith.constant 0 : index
    %c0_139 = arith.constant 0 : index
    %333 = vector.load %arg12[%c1_137, %c0_138, %c0_139] : memref<2x1x64xf32, #tpu.memory_space<vmem>>, vector<1x1x64xf32>
    %334 = vector.shape_cast %333 : vector<1x1x64xf32> to vector<1x64xf32>
    %335 = vector.broadcast %334 : vector<1x64xf32> to vector<8x64xf32>
    %336 = arith.addf %332, %335 : vector<8x64xf32>
    %cst_140 = arith.constant 5.000000e-01 : f32
    %337 = vector.broadcast %cst_140 : f32 to vector<8x64xf32>
    %338 = arith.mulf %337, %336 : vector<8x64xf32>
    %cst_141 = arith.constant 4.471500e-02 : f32
    %339 = vector.broadcast %cst_141 : f32 to vector<8x64xf32>
    %340 = arith.mulf %339, %336 : vector<8x64xf32>
    %341 = arith.mulf %340, %336 : vector<8x64xf32>
    %342 = arith.mulf %341, %336 : vector<8x64xf32>
    %343 = arith.addf %336, %342 : vector<8x64xf32>
    %cst_142 = arith.constant 0.797884583 : f32
    %344 = vector.broadcast %cst_142 : f32 to vector<8x64xf32>
    %345 = arith.mulf %344, %343 : vector<8x64xf32>
    %346 = math.tanh %345 : vector<8x64xf32>
    %cst_143 = arith.constant 1.000000e+00 : f32
    %347 = vector.broadcast %cst_143 : f32 to vector<8x64xf32>
    %348 = arith.addf %347, %346 : vector<8x64xf32>
    %349 = arith.mulf %338, %348 : vector<8x64xf32>
    %c1_144 = arith.constant 1 : index
    %c0_145 = arith.constant 0 : index
    %c0_146 = arith.constant 0 : index
    %350 = vector.load %arg13[%c1_144, %c0_145, %c0_146] : memref<2x64x32xf32, #tpu.memory_space<vmem>>, vector<1x64x32xf32>
    %351 = vector.shape_cast %350 : vector<1x64x32xf32> to vector<64x32xf32>
    %cst_147 = arith.constant dense<0.000000e+00> : vector<8x32xf32>
    %352 = tpu.matmul %349, %351, %cst_147 {dimension_numbers = #tpu.dot_dimension_numbers<[1], [0], [0], [1], [0, 0, 1, 1], [], []>} : vector<8x64xf32>, vector<64x32xf32>, vector<8x32xf32> -> vector<8x32xf32>
    %c1_148 = arith.constant 1 : index
    %c0_149 = arith.constant 0 : index
    %c0_150 = arith.constant 0 : index
    %353 = vector.load %arg14[%c1_148, %c0_149, %c0_150] : memref<2x1x32xf32, #tpu.memory_space<vmem>>, vector<1x1x32xf32>
    %354 = vector.shape_cast %353 : vector<1x1x32xf32> to vector<1x32xf32>
    %355 = vector.broadcast %354 : vector<1x32xf32> to vector<8x32xf32>
    %356 = arith.addf %352, %355 : vector<8x32xf32>
    %357 = arith.addf %329, %356 : vector<8x32xf32>
    %c1_151 = arith.constant 1 : index
    %c0_152 = arith.constant 0 : index
    %c0_153 = arith.constant 0 : index
    %358 = vector.load %arg15[%c1_151, %c0_152, %c0_153] : memref<2x1x32xf32, #tpu.memory_space<vmem>>, vector<1x1x32xf32>
    %359 = vector.shape_cast %358 : vector<1x1x32xf32> to vector<1x32xf32>
    %c1_154 = arith.constant 1 : index
    %c0_155 = arith.constant 0 : index
    %c0_156 = arith.constant 0 : index
    %360 = vector.load %arg16[%c1_154, %c0_155, %c0_156] : memref<2x1x32xf32, #tpu.memory_space<vmem>>, vector<1x1x32xf32>
    %361 = vector.shape_cast %360 : vector<1x1x32xf32> to vector<1x32xf32>
    %cst_157 = arith.constant dense<0.000000e+00> : vector<8xf32>
    %362 = vector.multi_reduction <add>, %357, %cst_157 [1] : vector<8x32xf32> to vector<8xf32>
    %363 = vector.shape_cast %362 : vector<8xf32> to vector<8x1xf32>
    %cst_158 = arith.constant 3.200000e+01 : f32
    %364 = vector.broadcast %cst_158 : f32 to vector<8x1xf32>
    %365 = arith.divf %363, %364 : vector<8x1xf32>
    %366 = vector.broadcast %365 : vector<8x1xf32> to vector<8x32xf32>
    %367 = arith.subf %357, %366 : vector<8x32xf32>
    %368 = arith.mulf %367, %367 : vector<8x32xf32>
    %cst_159 = arith.constant dense<0.000000e+00> : vector<8xf32>
    %369 = vector.multi_reduction <add>, %368, %cst_159 [1] : vector<8x32xf32> to vector<8xf32>
    %370 = vector.shape_cast %369 : vector<8xf32> to vector<8x1xf32>
    %cst_160 = arith.constant 3.200000e+01 : f32
    %371 = vector.broadcast %cst_160 : f32 to vector<8x1xf32>
    %372 = arith.divf %370, %371 : vector<8x1xf32>
    %373 = vector.broadcast %365 : vector<8x1xf32> to vector<8x32xf32>
    %374 = arith.subf %357, %373 : vector<8x32xf32>
    %cst_161 = arith.constant 9.99999974E-6 : f32
    %375 = vector.broadcast %cst_161 : f32 to vector<8x1xf32>
    %376 = arith.addf %372, %375 : vector<8x1xf32>
    %377 = math.rsqrt %376 : vector<8x1xf32>
    %378 = vector.broadcast %377 : vector<8x1xf32> to vector<8x32xf32>
    %379 = arith.mulf %374, %378 : vector<8x32xf32>
    %380 = vector.broadcast %359 : vector<1x32xf32> to vector<8x32xf32>
    %381 = arith.mulf %379, %380 : vector<8x32xf32>
    %382 = vector.broadcast %361 : vector<1x32xf32> to vector<8x32xf32>
    %383 = arith.addf %381, %382 : vector<8x32xf32>
    %384 = vector.extract_strided_slice %383 {offsets = [0, 0], sizes = [1, 32], strides = [1, 1]} : vector<8x32xf32> to vector<1x32xf32>
    %c0_162 = arith.constant 0 : index
    %c0_163 = arith.constant 0 : index
    %385 = vector.load %arg17[%c0_162, %c0_163] : memref<32x128xf32, #tpu.memory_space<vmem>>, vector<32x128xf32>
    %cst_164 = arith.constant dense<0.000000e+00> : vector<1x128xf32>
    %386 = tpu.matmul %384, %385, %cst_164 {dimension_numbers = #tpu.dot_dimension_numbers<[1], [0], [0], [1], [0, 0, 1, 1], [], []>} : vector<1x32xf32>, vector<32x128xf32>, vector<1x128xf32> -> vector<1x128xf32>
    %c0_165 = arith.constant 0 : index
    %c0_166 = arith.constant 0 : index
    %387 = vector.load %arg18[%c0_165, %c0_166] : memref<1x128xf32, #tpu.memory_space<vmem>>, vector<1x128xf32>
    %388 = arith.addf %386, %387 : vector<1x128xf32>
    %389 = vector.shape_cast %388 : vector<1x128xf32> to vector<1x1x128xf32>
    %c0_167 = arith.constant 0 : index
    %c0_168 = arith.constant 0 : index
    %c0_169 = arith.constant 0 : index
    %390 = vector.load %arg19[%c0_167, %c0_168, %c0_169] : memref<1x1x128xf32, #tpu.memory_space<vmem>>, vector<1x1x128xf32>
    tpu.vector_store %arg19[%c0_167, %c0_168, %c0_169], %389 {strides = array<i32>} : memref<1x1x128xf32, #tpu.memory_space<vmem>>, vector<1x1x128xf32>,
    return
  }
  func.func @transform_0(%arg0: i32) -> (i32, i32, i32) {
    %c0_i32 = arith.constant 0 : i32
    %c0_i32_0 = arith.constant 0 : i32
    %c0_i32_1 = arith.constant 0 : i32
    return %arg0, %c0_i32, %c0_i32_0 : i32, i32, i32
  }
  func.func @transform_1(%arg0: i32) -> (i32, i32, i32) {
    %c0_i32 = arith.constant 0 : i32
    %c0_i32_0 = arith.constant 0 : i32
    %c0_i32_1 = arith.constant 0 : i32
    return %arg0, %c0_i32, %c0_i32_0 : i32, i32, i32
  }
  func.func @transform_2(%arg0: i32) -> (i32, i32) {
    %c0_i32 = arith.constant 0 : i32
    %c0_i32_0 = arith.constant 0 : i32
    %c0_i32_1 = arith.constant 0 : i32
    return %c0_i32, %c0_i32_0 : i32, i32
  }
  func.func @transform_3(%arg0: i32) -> (i32, i32) {
    %c0_i32 = arith.constant 0 : i32
    %c0_i32_0 = arith.constant 0 : i32
    %c0_i32_1 = arith.constant 0 : i32
    return %c0_i32, %c0_i32_0 : i32, i32
  }
  func.func @transform_4(%arg0: i32) -> (i32, i32, i32) {
    %c0_i32 = arith.constant 0 : i32
    %c0_i32_0 = arith.constant 0 : i32
    %c0_i32_1 = arith.constant 0 : i32
    %c0_i32_2 = arith.constant 0 : i32
    return %c0_i32, %c0_i32_0, %c0_i32_1 : i32, i32, i32
  }
  func.func @transform_5(%arg0: i32) -> (i32, i32, i32) {
    %c0_i32 = arith.constant 0 : i32
    %c0_i32_0 = arith.constant 0 : i32
    %c0_i32_1 = arith.constant 0 : i32
    %c0_i32_2 = arith.constant 0 : i32
    return %c0_i32, %c0_i32_0, %c0_i32_1 : i32, i32, i32
  }
  func.func @transform_6(%arg0: i32) -> (i32, i32, i32) {
    %c0_i32 = arith.constant 0 : i32
    %c0_i32_0 = arith.constant 0 : i32
    %c0_i32_1 = arith.constant 0 : i32
    %c0_i32_2 = arith.constant 0 : i32
    return %c0_i32, %c0_i32_0, %c0_i32_1 : i32, i32, i32
  }
  func.func @transform_7(%arg0: i32) -> (i32, i32, i32) {
    %c0_i32 = arith.constant 0 : i32
    %c0_i32_0 = arith.constant 0 : i32
    %c0_i32_1 = arith.constant 0 : i32
    %c0_i32_2 = arith.constant 0 : i32
    return %c0_i32, %c0_i32_0, %c0_i32_1 : i32, i32, i32
  }
  func.func @transform_8(%arg0: i32) -> (i32, i32, i32) {
    %c0_i32 = arith.constant 0 : i32
    %c0_i32_0 = arith.constant 0 : i32
    %c0_i32_1 = arith.constant 0 : i32
    %c0_i32_2 = arith.constant 0 : i32
    return %c0_i32, %c0_i32_0, %c0_i32_1 : i32, i32, i32
  }
  func.func @transform_9(%arg0: i32) -> (i32, i32, i32) {
    %c0_i32 = arith.constant 0 : i32
    %c0_i32_0 = arith.constant 0 : i32
    %c0_i32_1 = arith.constant 0 : i32
    %c0_i32_2 = arith.constant 0 : i32
    return %c0_i32, %c0_i32_0, %c0_i32_1 : i32, i32, i32
  }
  func.func @transform_10(%arg0: i32) -> (i32, i32, i32) {
    %c0_i32 = arith.constant 0 : i32
    %c0_i32_0 = arith.constant 0 : i32
    %c0_i32_1 = arith.constant 0 : i32
    %c0_i32_2 = arith.constant 0 : i32
    return %c0_i32, %c0_i32_0, %c0_i32_1 : i32, i32, i32
  }
  func.func @transform_11(%arg0: i32) -> (i32, i32, i32) {
    %c0_i32 = arith.constant 0 : i32
    %c0_i32_0 = arith.constant 0 : i32
    %c0_i32_1 = arith.constant 0 : i32
    %c0_i32_2 = arith.constant 0 : i32
    return %c0_i32, %c0_i32_0, %c0_i32_1 : i32, i32, i32
  }
  func.func @transform_12(%arg0: i32) -> (i32, i32, i32) {
    %c0_i32 = arith.constant 0 : i32
    %c0_i32_0 = arith.constant 0 : i32
    %c0_i32_1 = arith.constant 0 : i32
    %c0_i32_2 = arith.constant 0 : i32
    return %c0_i32, %c0_i32_0, %c0_i32_1 : i32, i32, i32
  }
  func.func @transform_13(%arg0: i32) -> (i32, i32, i32) {
    %c0_i32 = arith.constant 0 : i32
    %c0_i32_0 = arith.constant 0 : i32
    %c0_i32_1 = arith.constant 0 : i32
    %c0_i32_2 = arith.constant 0 : i32
    return %c0_i32, %c0_i32_0, %c0_i32_1 : i32, i32, i32
  }
  func.func @transform_14(%arg0: i32) -> (i32, i32, i32) {
    %c0_i32 = arith.constant 0 : i32
    %c0_i32_0 = arith.constant 0 : i32
    %c0_i32_1 = arith.constant 0 : i32
    %c0_i32_2 = arith.constant 0 : i32
    return %c0_i32, %c0_i32_0, %c0_i32_1 : i32, i32, i32
  }
  func.func @transform_15(%arg0: i32) -> (i32, i32, i32) {
    %c0_i32 = arith.constant 0 : i32
    %c0_i32_0 = arith.constant 0 : i32
    %c0_i32_1 = arith.constant 0 : i32
    %c0_i32_2 = arith.constant 0 : i32
    return %c0_i32, %c0_i32_0, %c0_i32_1 : i32, i32, i32
  }
  func.func @transform_16(%arg0: i32) -> (i32, i32) {
    %c0_i32 = arith.constant 0 : i32
    %c0_i32_0 = arith.constant 0 : i32
    %c0_i32_1 = arith.constant 0 : i32
    return %c0_i32, %c0_i32_0 : i32, i32
  }
  func.func @transform_17(%arg0: i32) -> (i32, i32) {
    %c0_i32 = arith.constant 0 : i32
    %c0_i32_0 = arith.constant 0 : i32
    %c0_i32_1 = arith.constant 0 : i32
    return %c0_i32, %c0_i32_0 : i32, i32
  }
  func.func @transform_18(%arg0: i32) -> (i32, i32, i32) {
    %c0_i32 = arith.constant 0 : i32
    %c0_i32_0 = arith.constant 0 : i32
    %c0_i32_1 = arith.constant 0 : i32
    return %arg0, %c0_i32, %c0_i32_0 : i32, i32, i32
  }
}

</mosaic_0001>

<bundles_post_ra>
// kernel: emotion_classifier_forward.1
= control target key start
LH: loop header
LB: loop body
LE: loop exit
PB: predicated region body
PF: predicated region fallthrough
CT: control target
= control target key end

     0   :  { %s4162_s0 = inlined_call_operand.vmem [shape: f32[2,8,32], index: 0, kind: input, shape index: {}]   ;;  %s4163_s1 = inlined_call_operand.vmem [shape: f32[2,1,8], index: 1, kind: input, shape index: {}]   ;;  %s4164_s2 = inlined_call_operand.vmem [shape: f32[1,32], index: 2, kind: input, shape index: {}]   ;;  %s4165_s3 = inlined_call_operand.vmem [shape: f32[1,32], index: 3, kind: input, shape index: {}]   ;;  %s4166_s4 = inlined_call_operand.vmem [shape: f32[2,32,96], index: 4, kind: input, shape index: {}]   ;;  %s4167_s5 = inlined_call_operand.vmem [shape: f32[2,1,96], index: 5, kind: input, shape index: {}]   ;;  %s4168_s6 = inlined_call_operand.vmem [shape: f32[2,32,32], index: 6, kind: input, shape index: {}]   ;;  %s4169_s7 = inlined_call_operand.vmem [shape: f32[2,1,32], index: 7, kind: input, shape index: {}]   ;;  %s4170_s8 = inlined_call_operand.vmem [shape: f32[2,1,32], index: 8, kind: input, shape index: {}]   ;;  %s4171_s9 = inlined_call_operand.vmem [shape: f32[2,1,32], index: 9, kind: input, shape index: {}]   ;;  %s4172_s10 = inlined_call_operand.vmem [shape: f32[2,32,64], index: 10, kind: input, shape index: {}]   ;;  %s4173_s11 = inlined_call_operand.vmem [shape: f32[2,1,64], index: 11, kind: input, shape index: {}]   ;;  %s4174_s12 = inlined_call_operand.vmem [shape: f32[2,64,32], index: 12, kind: input, shape index: {}]   ;;  %s4175_s13 = inlined_call_operand.vmem [shape: f32[2,1,32], index: 13, kind: input, shape index: {}]   ;;  %s4176_s14 = inlined_call_operand.vmem [shape: f32[2,1,32], index: 14, kind: input, shape index: {}]   ;;  %s4177_s15 = inlined_call_operand.vmem [shape: f32[2,1,32], index: 15, kind: input, shape index: {}]   ;;  %s4178_s16 = inlined_call_operand.vmem [shape: f32[32,128], index: 16, kind: input, shape index: {}]   ;;  %s4179_s17 = inlined_call_operand.vmem [shape: f32[1,128], index: 17, kind: input, shape index: {}]   ;;  %s4180_s18 = inlined_call_operand.hbm [shape: f32[2,1,128], index: 18, kind: output, shape index: {}]  }
   0x1   :  { %4196 = sst [smem:[#allocation7_spill]] %s4162_s0 }
   0x2   :  { %4197 = sst [smem:[#allocation8_spill]] %s4163_s1 }
   0x3   :  { %4198 = sst [smem:[#allocation9_spill]] %s4164_s2 }
   0x4   :  { %4199 = sst [smem:[#allocation10_spill]] %s4165_s3 }
   0x5   :  { %4200 = sst [smem:[#allocation11_spill]] %s4166_s4 }
   0x6   :  { %4201 = sst [smem:[#allocation12_spill]] %s4167_s5 }
   0x7   :  { %23 = vsyncpa [#allocation3], 0 }
   0x8   :  { %25 = vsyncpa [#allocation3 + $0x1], 0  ;;  %s3621_s27 = smov 0   ;;  %s3623_s28 = smov 0  }
   0x9   :  { %s3625_s29 = smov 0   ;;  %s3627_s30 = smov 0  }
   0xa LB: > { %4202 = sst [smem:[#allocation5_spill]] %s3503_s29  ;;  %s3642_s0 = sadd.s32 4294967295, %s3507_s30   ;;  %s3507_s30 = sphi %s3627_s30, %s4230_s30   ;;  %s3503_s29 = sphi %s3625_s29, %s4227_s29   ;;  %s3499_s28 = sphi %s3623_s28, %s4229_s28   ;;  %s3495_s27 = sphi %s3621_s27, %s4228_s27  }
   0xb   : > { %s2979_s19 = sadd.s32 4294967294, %s3507_s30   ;;  %s3646_s1 = sadd.s32 1, %s3507_s30  }
   0xc   : > { %s426_s20 = sadd.s32 1, %s3503_s29  ;;  %s423_s21 = ssub.s32 %s3507_s30, %s3646_s1 }
   0xd   : > { %p436_p0 = scmp.ne.s32.totalorder %s3503_s29, %s3499_s28  ;;  %p424_p1 = scmp.eq.s32.totalorder %s423_s21, 0 }
   0xe   : > { %p437_p2 = scmp.eq.s32.totalorder %s3642_s0, 1  ;;  %p442_p3 = scmp.ne.s32.totalorder %s3499_s28, %s3495_s27 }
   0xf   : > { %p443_p4 = scmp.eq.s32.totalorder %s2979_s19, 1  ;;  %p2982_p7 = scmp.ge.s32.totalorder %s3507_s30, 1 }
  0x10   : > { %s3657_s22 = scalar_select %p424_p1, %s3503_s29, %s426_s20  }
  0x11   : > { %p3659_p5 = por %p437_p2, %p436_p0  ;;  %p3663_p6 = por %p443_p4, %p442_p3 }
  0x12   : > { %4203 = sst [smem:[#allocation6_spill]] %s3657_s22  ;;  %p522_p8 = scmp.lt.s32.totalorder %s3507_s30, 3 }
  0x14   : > { %p523_p9 = pnand %p2982_p7, %p522_p8 }
  0x15   : > { %p577_p10 = scmp.lt.s32.totalorder (!%p523_p9), %s3642_s0, 1  ;;  %s4206_s20 = sld [smem:[#allocation7_spill]] (!%p523_p9) }
  0x16   : > { %526 = sbr.rel (%p523_p9) target bundleno = 5809 (0x16b1), region = 92  ;;  %s4207_s4 = sld [smem:[#allocation11_spill]] (!%p523_p9) }
  0x17   : > { %s4209_s3 = sld [smem:[#allocation10_spill]] (!%p523_p9)  ;;  %s4191_s26 = smov (!%p523_p9), 96  }
  0x18   : > { %s4210_s5 = sld [smem:[#allocation12_spill]] (!%p523_p9)  ;;  %s4189_s19 = smov (!%p523_p9), 112  }
  0x19   : > { %s4211_s29 = sld [smem:[#allocation8_spill]] (!%p523_p9) }
  0x1b   : > { %s3671_s24 = scalar_select %p577_p10, %s3642_s0, 1  ;;  %vm587_vm0 = vcmask 261120   ;;  %v3509_v8 = vmov 0.0   ;;  %vm3510_vm1 = vmmov 0   ;;  %vm706_vm2 = vcmask 64512  }
  0x1c   : > { %v622_v7 = vld [vmem:[%s4207_s4 + $0x18] sm:$0xff]  ;;  %3151 = vmatprep.subr.mxu0 %v3509_v8  ;;  %v621_v9 = vld [vmem:[%s4207_s4 + $0x10] sm:$0xff]  ;;  %3159 = vmatprep.mubr.msk.f32.mxu0 %vm3510_vm1, %v3509_v8  ;;  %v620_v10 = vld [vmem:[%s4207_s4 + $0x8] sm:$0xff]  ;;  %v783_v27 = vlaneseq  ;;  %vm1390_vm3 = vcmask 130048   ;;  %vm1392_vm4 = vcmask 195584   ;;  %vm1616_vm5 = vcmask 523264  }
  0x1d   : > { %s2983_s25 = sshll.u32 %s3671_s24, 3  ;;  %3152 = vmatpush3.msra.mxu0 %v622_v7  ;;  %3162 = vmatprep.subr.mxu1 %v3509_v8  ;;  %v619_v11 = vld [vmem:[%s4207_s4] sm:$0xff] }
  0x1e   : > { %s580_s21 = scalar_lea.vmem %s4206_s20, %s2983_s25  ;;  %3153 = vmatprep.subr.mxu0 %v3509_v8  ;;  %3164 = vmatprep.mubr.msk.f32.mxu1 %vm3510_vm1, %v3509_v8  ;;  %s4208_s25 = sld [smem:[#allocation9_spill]]  ;;  %v2985_v18 = vld [vmem:[%s4209_s3] ss:$0 sm:$0xff]  ;;  %v784_v30 = vshrl.u32 %v783_v27, 7 }
  0x1f   : > { %v584_v0 = vld [vmem:[%s580_s21] sm:$0xff]  ;;  %3154 = vmatpush3.msra.mxu0 %v621_v9  ;;  %s4182_s21 = smov 64   ;;  %s583_s22 = scalar_lea.vmem %s4211_s29, %s3671_s24 }
  0x20   : > { %v588_v1 = vsel %vm587_vm0, %v584_v0, 0.0  ;;  %3155 = vmatprep.subr.mxu0 %v3509_v8  ;;  %v2986_v21 = vld [vmem:[%s4210_s5] ss:$0 sm:$0xff]  ;;  %v785_v32 = vsub.s32 0, %v784_v30  ;;  %s4190_s24 = smov 120   ;;  %s4183_s20 = smov 72  }
  0x21   : > { %589 = vadd.xlane.f32.xlu0 %v588_v1  ;;  %3156 = vmatpush3.msra.mxu0 %v620_v10  ;;  %v616_v28 = vld [vmem:[%s583_s22] sm:$0x1]  ;;  %s4184_s29 = smov 104   ;;  %s4187_s22 = smov 48  }
  0x22   : > { %3157 = vmatprep.subr.mxu0 %v3509_v8  ;;  %v617_v29 = vsub.f32 1.0, %v616_v28 }
  0x23   : > { %3158 = vmatpush3.msra.mxu0 %v619_v11 }
  0x24   : > { %3182 = vmatprep.subr.mxu0 %v3509_v8  ;;  %v2984_v16 = vld [vmem:[%s4208_s25] ss:$0 sm:$0xff]  ;;  %s4195_s25 = smov 88   ;;  %v618_v31 = vmul.f32 -1e+09, %v617_v29 }
  0x26   : > { %v3735_v33 = vrot.slane %v618_v31, %v785_v32 }
  0xaa   : > { %v590_v2 = vpop.xlane.xlu0 %589 }
  0xab   : > { %v592_v3 = vmul.f32 0.03125, %v590_v2 }
  0xad   : > { %v593_v4 = vsub.f32 %v584_v0, %v592_v3 }
  0xaf   : > { %v594_v5 = vmul.f32 %v593_v4, %v593_v4 }
  0xb1   : > { %v595_v6 = vsel %vm587_vm0, %v594_v5, 0.0 }
  0xb2   : > { %596 = vadd.xlane.f32.xlu0 %v595_v6 }
 0x13b   : > { %v597_v12 = vpop.xlane.xlu0 %596 }
 0x13c   : > { %v598_v13 = vmul.f32 0.03125, %v597_v12 }
 0x13e   : > { %v599_v14 = vadd.f32 1e-05, %v598_v13 }
 0x140   : > { %3401 = vrsqrt.f32 %v599_v14 }
 0x14d   : > { %v3402_v15 = vpop.eup %3401 }
 0x14e   : > { %v601_v17 = vmul.f32 %v3402_v15, %v593_v4 }
 0x150   : > { %v608_v19 = vmul.f32 %v2984_v16, %v601_v17 }
 0x152   : > { %v3707_v20 = vadd.f32 %v2985_v18, %v608_v19 }
 0x154   : > { %3160 = vmatmul.mubr.msk.f32.vlgmr.msra.gmra.mxu0 %vm587_vm0, %v3707_v20 }
 0x155   : > { %3184 = vmatprep.mubr.msk.f32.mxu0 %vm3510_vm1, %v3509_v8 }
 0x214   : > { %v699_v22 = vpop.f32.mrf.mxu0 }
 0x215   : > { %v3716_v23 = vadd.f32 %v2986_v21, %v699_v22 }
 0x216   : > { %v3161_v24 = vpop.f32.mrf.mxu0 }
 0x217   : > { %800 = vrot.lane.b32.xlu0 %v3716_v23, %s4182_s21  ;;  %704 = vrot.lane.b32.xlu1 %v3716_v23, %s4191_s26  ;;  %s4188_s21 = smov 80   ;;  %s4212_s26 = smov 88  }
 0x21b   : > { %878 = vrot.lane.b32.xlu0 %v3716_v23, %s4195_s25  ;;  %s4218_s25 = smov 72  }
 0x289   : > { %v705_v25 = vpop.permute.xlu1 %704  ;;  %v801_v26 = vpop.permute.xlu0 %800 }
 0x28a   : > { %3163 = vmatpush3.xpose.msk.msra.mxu1 %vm706_vm2, %v705_v25 }
 0x28b   : > { %3167 = vmatprep.subr.mxu1 %v3509_v8 }
 0x28d   : > { %3165 = vmatmul.mubr.msk.f32.vlgmr.msra.gmra.mxu1 %vm706_vm2, %v3716_v23  ;;  %v879_v45 = vpop.permute.xlu0 %878 }
 0x28e   : > { %3168 = vmatpush3.msra.mxu1 %v801_v26  ;;  %3169 = vmatprep.mubr.msk.f32.mxu1 %vm3510_vm1, %v3509_v8 }
 0x28f   : > { %3172 = vmatprep.subr.mxu1 %v3509_v8 }
 0x34d   : > { %v777_v34 = vpop.f32.mrf.mxu1 }
 0x34e   : > { %v781_v35 = vmul.f32 0.35355338, %v777_v34 }
 0x34f   : > { %v3166_v36 = vpop.f32.mrf.mxu1 }
 0x350   : > { %v788_v37 = vadd.f32 %v3735_v33, %v781_v35  ;;  %v1397_v36 = vld [vmem:[%s4168_s6 + $0x18] sm:$0xff] }
 0x352   : > { %v789_v38 = vsel %vm706_vm2, %v788_v37, -inf }
 0x353   : > { %790 = vmax.xlane.f32.xlu1 %v789_v38  ;;  %v1395_v38 = vld [vmem:[%s4168_s6 + $0x8] sm:$0xff] }
 0x364   : > { %1045 = vrot.lane.b32.xlu1 %v3716_v23, %s4188_s21  ;;  %s4194_s21 = smov 8  }
 0x3dc   : > { %v791_v39 = vpop.xlane.xlu1 %790 }
 0x3dd   : > { %v792_v40 = vsub.f32 %v788_v37, %v791_v39  ;;  %v1396_v37 = vld [vmem:[%s4168_s6 + $0x10] sm:$0xff]  ;;  %v1394_v39 = vld [vmem:[%s4168_s6] sm:$0xff] }
 0x3df   : > { %v793_v41 = vmul.f32 1.442695, %v792_v40 }
 0x3e0   : > { %v1046_v42 = vpop.permute.xlu1 %1045 }
 0x3e1   : > { %3403 = vpow2.f32 %v793_v41  ;;  %3183 = vmatpush3.xpose.msk.msra.mxu0 %vm706_vm2, %v1046_v42 }
 0x3e2   : > { %3192 = vmatprep.subr.mxu0 %v3509_v8 }
 0x3ee   : > { %v3404_v43 = vpop.eup %3403 }
 0x3ef   : > { %v795_v44 = vsel %vm706_vm2, %v3404_v43, 0.0 }
 0x3f0   : > { %796 = vadd.xlane.f32.xlu0 %v795_v44 }
 0x406   : > { %876 = vrot.lane.b32.xlu0 %v3716_v23, %s4190_s24  ;;  %s4193_s24 = smov 16  }
 0x40a   : > { %1043 = vrot.lane.b32.xlu0 %v3716_v23, %s4189_s19  ;;  %s4192_s19 = smov 24  }
 0x40e   : > { %1212 = vrot.lane.b32.xlu0 %v3716_v23, %s4183_s20  ;;  %s4185_s20 = smov 56  }
 0x412   : > { %1210 = vrot.lane.b32.xlu0 %v3716_v23, %s4184_s29  ;;  %s4186_s29 = smov 40  }
 0x479   : > { %v797_v46 = vpop.xlane.xlu0 %796 }
 0x47a   : > { %3405 = vrcp.f32 %v797_v46 }
 0x47d   : > { %v877_v47 = vpop.permute.xlu0 %876 }
 0x481   : > { %v1044_v48 = vpop.permute.xlu0 %1043 }
 0x482   : > { %3185 = vmatmul.mubr.msk.f32.vlgmr.msra.gmra.mxu0 %vm706_vm2, %v1044_v48 }
 0x483   : > { %3194 = vmatprep.mubr.msk.f32.mxu0 %vm3510_vm1, %v3509_v8 }
 0x485   : > { %v1213_v49 = vpop.permute.xlu0 %1212 }
 0x486   : > { %3193 = vmatpush3.xpose.msk.msra.mxu0 %vm706_vm2, %v1213_v49 }
 0x487   : > { %v3406_v50 = vpop.eup %3405  ;;  %3202 = vmatprep.subr.mxu0 %v3509_v8 }
 0x488   : > { %v799_v51 = vmul.f32 %v3406_v50, %v3404_v43 }
 0x489   : > { %v1211_v52 = vpop.permute.xlu0 %1210 }
 0x48a   : > { %3170 = vmatmul.mubr.msk.f32.vlgmr.msra.gmra.mxu1 %vm706_vm2, %v799_v51  ;;  %3195 = vmatmul.mubr.msk.f32.vlgmr.msra.gmra.mxu0 %vm706_vm2, %v1211_v52  ;;  %v3000_v52 = vld [vmem:[%s4169_s7] ss:$0 sm:$0xff] }
 0x48b   : > { %3173 = vmatpush3.xpose.msk.msra.mxu1 %vm706_vm2, %v879_v45  ;;  %3174 = vmatprep.mubr.msk.f32.mxu1 %vm3510_vm1, %v3509_v8 }
 0x48c   : > { %3177 = vmatprep.subr.mxu1 %v3509_v8  ;;  %3210 = vmatprep.mubr.msk.f32.mxu0 %vm3510_vm1, %v3509_v8 }
 0x48d   : > { %3203 = vmatpush3.msra.mxu0 %v1397_v36 }
 0x48e   : > { %3175 = vmatmul.mubr.msk.f32.vlgmr.msra.gmra.mxu1 %vm706_vm2, %v877_v47  ;;  %3204 = vmatprep.subr.mxu0 %v3509_v8 }
 0x48f   : > { %3179 = vmatprep.mubr.msk.f32.mxu1 %vm3510_vm1, %v3509_v8  ;;  %3205 = vmatpush3.msra.mxu0 %v1396_v37 }
 0x490   : > { %3206 = vmatprep.subr.mxu0 %v3509_v8 }
 0x491   : > { %3207 = vmatpush3.msra.mxu0 %v1395_v38 }
 0x492   : > { %3208 = vmatprep.subr.mxu0 %v3509_v8 }
 0x493   : > { %3209 = vmatpush3.msra.mxu0 %v1394_v39 }
 0x494   : > { %3224 = vmatprep.subr.mxu0 %v3509_v8 }
 0x542   : > { %v1117_v53 = vpop.f32.mrf.mxu0 }
 0x543   : > { %v1121_v54 = vmul.f32 0.35355338, %v1117_v53 }
 0x544   : > { %v3186_v55 = vpop.f32.mrf.mxu0 }
 0x545   : > { %v1122_v56 = vadd.f32 %v1121_v54, %v3735_v33 }
 0x547   : > { %v1123_v57 = vsel %vm706_vm2, %v1122_v56, -inf }
 0x548   : > { %1124 = vmax.xlane.f32.xlu1 %v1123_v57 }
 0x54a   : > { %v3770_v58 = vpop.f32.mrf.mxu1  ;;  %v1284_v59 = vpop.f32.mrf.mxu0 }
 0x54b   : > { %v1288_v63 = vmul.f32 0.35355338, %v1284_v59 }
 0x54c   : > { %v3171_v60 = vpop.f32.mrf.mxu1  ;;  %v3196_v61 = vpop.f32.mrf.mxu0 }
 0x54d   : > { %v1289_v4 = vadd.f32 %v1288_v63, %v3735_v33  ;;  %v1511_v63 = vld [vmem:[%s4172_s10 + $0x18] sm:$0xff] }
 0x54e   : > { %v950_v62 = vpop.f32.mrf.mxu1 }
 0x54f   : > { %v954_v0 = vmul.f32 0.35355338, %v950_v62  ;;  %v1290_v5 = vsel %vm706_vm2, %v1289_v4, -inf }
 0x550   : > { %v3176_v1 = vpop.f32.mrf.mxu1 }
 0x551   : > { %v955_v2 = vadd.f32 %v954_v0, %v3735_v33  ;;  %v1510_v0 = vld [vmem:[%s4172_s10 + $0x10] sm:$0xff]  ;;  %v1508_v1 = vld [vmem:[%s4172_s10] sm:$0xff] }
 0x553   : > { %v956_v3 = vsel %vm706_vm2, %v955_v2, -inf }
 0x554   : > { %957 = vmax.xlane.f32.xlu0 %v956_v3 }
 0x558   : > { %1291 = vmax.xlane.f32.xlu0 %v1290_v5 }
 0x5d1   : > { %v1125_v6 = vpop.xlane.xlu1 %1124 }
 0x5d2   : > { %v1126_v7 = vsub.f32 %v1122_v56, %v1125_v6  ;;  %v3002_v6 = vld [vmem:[%s4170_s8] ss:$0 sm:$0xff] }
 0x5d4   : > { %v1127_v9 = vmul.f32 1.442695, %v1126_v7 }
 0x5d6   : > { %3407 = vpow2.f32 %v1127_v9  ;;  %v3003_v9 = vld [vmem:[%s4171_s9] ss:$0 sm:$0xff] }
 0x5dd   : > { %v958_v10 = vpop.xlane.xlu0 %957 }
 0x5de   : > { %v959_v11 = vsub.f32 %v955_v2, %v958_v10 }
 0x5e0   : > { %v960_v12 = vmul.f32 1.442695, %v959_v11 }
 0x5e1   : > { %v1292_v13 = vpop.xlane.xlu0 %1291 }
 0x5e2   : > { %3409 = vpow2.f32 %v960_v12  ;;  %v1293_v14 = vsub.f32 %v1289_v4, %v1292_v13  ;;  %v1608_v12 = vld [vmem:[%s4174_s12 + $0x38] sm:$0xff]  ;;  %v1607_v13 = vld [vmem:[%s4174_s12 + $0x30] sm:$0xff] }
 0x5e3   : > { %v3408_v15 = vpop.eup %3407 }
 0x5e4   : > { %v1294_v16 = vmul.f32 1.442695, %v1293_v14  ;;  %v1129_v17 = vsel %vm706_vm2, %v3408_v15, 0.0  ;;  %v1606_v14 = vld [vmem:[%s4174_s12 + $0x28] sm:$0xff] }
 0x5e5   : > { %1130 = vadd.xlane.f32.xlu0 %v1129_v17  ;;  %v1603_v17 = vld [vmem:[%s4174_s12 + $0x10] sm:$0xff] }
 0x5e6   : > { %3411 = vpow2.f32 %v1294_v16  ;;  %v1604_v16 = vld [vmem:[%s4174_s12 + $0x18] sm:$0xff] }
 0x5ef   : > { %v3410_v18 = vpop.eup %3409 }
 0x5f0   : > { %v962_v19 = vsel %vm706_vm2, %v3410_v18, 0.0 }
 0x5f1   : > { %963 = vadd.xlane.f32.xlu0 %v962_v19  ;;  %v1601_v19 = vld [vmem:[%s4174_s12] sm:$0xff] }
 0x5f3   : > { %v3412_v21 = vpop.eup %3411 }
 0x5f4   : > { %v1296_v22 = vsel %vm706_vm2, %v3412_v21, 0.0 }
 0x5f5   : > { %1297 = vadd.xlane.f32.xlu1 %v1296_v22 }
 0x606   : > { %1134 = vrot.lane.b32.xlu1 %v3716_v23, %s4187_s22  ;;  %s4216_s22 = smov 80  }
 0x607   : > { %967 = vrot.lane.b32.xlu0 %v3716_v23, %s4185_s20  ;;  %s4217_s20 = smov 104  }
 0x60a   : > { %1301 = vrot.lane.b32.xlu1 %v3716_v23, %s4186_s29  ;;  %s4213_s29 = smov 96  }
 0x66e   : > { %v1131_v24 = vpop.xlane.xlu0 %1130 }
 0x67a   : > { %v964_v25 = vpop.xlane.xlu0 %963 }
 0x67b   : > { %3413 = vrcp.f32 %v964_v25 }
 0x67c   : > { %3415 = vrcp.f32 %v1131_v24 }
 0x67e   : > { %v1298_v26 = vpop.xlane.xlu1 %1297  ;;  %v968_v27 = vpop.permute.xlu0 %967 }
 0x67f   : > { %3178 = vmatpush3.msra.mxu1 %v968_v27  ;;  %3417 = vrcp.f32 %v1298_v26 }
 0x680   : > { %3187 = vmatprep.subr.mxu1 %v3509_v8 }
 0x682   : > { %v1135_v29 = vpop.permute.xlu1 %1134 }
 0x686   : > { %v1302_v34 = vpop.permute.xlu1 %1301 }
 0x688   : > { %v3414_v28 = vpop.eup %3413 }
 0x689   : > { %v966_v30 = vmul.f32 %v3414_v28, %v3410_v18  ;;  %v3416_v31 = vpop.eup %3415  ;;  %v1602_v18 = vld [vmem:[%s4174_s12 + $0x8] sm:$0xff] }
 0x68a   : > { %v1133_v23 = vmul.f32 %v3416_v31, %v3408_v15  ;;  %v1605_v15 = vld [vmem:[%s4174_s12 + $0x20] sm:$0xff] }
 0x68b   : > { %3180 = vmatmul.mubr.msk.f32.vlgmr.msra.gmra.mxu1 %vm706_vm2, %v966_v30 }
 0x68c   : > { %3188 = vmatpush3.msra.mxu1 %v1135_v29  ;;  %3189 = vmatprep.mubr.msk.f32.mxu1 %vm3510_vm1, %v3509_v8  ;;  %v3418_v32 = vpop.eup %3417 }
 0x68d   : > { %3197 = vmatprep.subr.mxu1 %v3509_v8  ;;  %v1300_v35 = vmul.f32 %v3418_v32, %v3412_v21  ;;  %v3004_v21 = vld [vmem:[%s4173_s11] ss:$0 sm:$0xff] }
 0x68f   : > { %3190 = vmatmul.mubr.msk.f32.vlgmr.msra.gmra.mxu1 %vm706_vm2, %v1133_v23 }
 0x690   : > { %3198 = vmatpush3.msra.mxu1 %v1302_v34  ;;  %3199 = vmatprep.mubr.msk.f32.mxu1 %vm3510_vm1, %v3509_v8 }
 0x691   : > { %3213 = vmatprep.subr.mxu1 %v3509_v8 }
 0x693   : > { %3200 = vmatmul.mubr.msk.f32.vlgmr.msra.gmra.mxu1 %vm706_vm2, %v1300_v35  ;;  %v3006_v35 = vld [vmem:[%s4175_s13] ss:$0 sm:$0xff] }
 0x694   : > { %3221 = vmatprep.mubr.msk.f32.mxu1 %vm3510_vm1, %v3509_v8  ;;  %3214 = vmatpush3.msra.mxu1 %v1511_v63 }
 0x695   : > { %3215 = vmatprep.subr.mxu1 %v3509_v8 }
 0x696   : > { %3216 = vmatpush3.msra.mxu1 %v1510_v0 }
 0x697   : > { %3217 = vmatprep.subr.mxu1 %v3509_v8 }
 0x74b   : > { %v1039_v40 = vpop.f32.mrf.mxu1 }
 0x74c   : > { %1378 = vrot.lane.b32.xlu1 %v1039_v40, %s4194_s21  ;;  %s4219_s21 = smov 64  }
 0x74d   : > { %v3181_v41 = vpop.f32.mrf.mxu1 }
 0x74f   : > { %v1206_v42 = vpop.f32.mrf.mxu1 }
 0x750   : > { %1382 = vrot.lane.b32.xlu0 %v1206_v42, %s4193_s24  ;;  %s4214_s24 = smov 120  }
 0x751   : > { %v3191_v43 = vpop.f32.mrf.mxu1 }
 0x753   : > { %v1373_v44 = vpop.f32.mrf.mxu1 }
 0x754   : > { %1386 = vrot.lane.b32.xlu1 %v1373_v44, %s4192_s19  ;;  %s4215_s19 = smov 112  }
 0x755   : > { %v3201_v45 = vpop.f32.mrf.mxu1 }
 0x7be   : > { %v1379_v46 = vpop.permute.xlu1 %1378 }
 0x7bf   : > { %v1389_v48 = vsel %vm706_vm2, %v3770_v58, %v1379_v46  ;;  %v3013_v46 = vld [vmem:[%s4207_s4 + $0x38] sm:$0xff] }
 0x7c2   : > { %v1383_v47 = vpop.permute.xlu0 %1382 }
 0x7c3   : > { %v1391_v49 = vsel %vm1390_vm3, %v1389_v48, %v1383_v47  ;;  %v3012_v47 = vld [vmem:[%s4207_s4 + $0x30] sm:$0xff]  ;;  %v3011_v48 = vld [vmem:[%s4207_s4 + $0x28] sm:$0xff] }
 0x7c6   : > { %v1387_v50 = vpop.permute.xlu1 %1386 }
 0x7c7   : > { %v1393_v51 = vsel %vm1392_vm4, %v1391_v49, %v1387_v50  ;;  %v3010_v49 = vld [vmem:[%s4207_s4 + $0x20] sm:$0xff] }
 0x7c8   : > { %3211 = vmatmul.mubr.msk.f32.vlgmr.msra.gmra.mxu0 %vm587_vm0, %v1393_v51 }
 0x7c9   : > { %3240 = vmatprep.mubr.msk.f32.mxu0 %vm3510_vm1, %v3509_v8  ;;  %3225 = vmatpush3.msra.mxu0 %v1608_v12 }
 0x7ca   : > { %3226 = vmatprep.subr.mxu0 %v3509_v8 }
 0x7cb   : > { %3227 = vmatpush3.msra.mxu0 %v1607_v13 }
 0x7cc   : > { %3228 = vmatprep.subr.mxu0 %v3509_v8 }
 0x7cd   : > { %3229 = vmatpush3.msra.mxu0 %v1606_v14 }
 0x7ce   : > { %3230 = vmatprep.subr.mxu0 %v3509_v8 }
 0x7cf   : > { %3231 = vmatpush3.msra.mxu0 %v1605_v15 }
 0x7d0   : > { %3232 = vmatprep.subr.mxu0 %v3509_v8 }
 0x7d1   : > { %3233 = vmatpush3.msra.mxu0 %v1604_v16 }
 0x7d2   : > { %3234 = vmatprep.subr.mxu0 %v3509_v8 }
 0x7d3   : > { %3235 = vmatpush3.msra.mxu0 %v1603_v17 }
 0x7d4   : > { %3236 = vmatprep.subr.mxu0 %v3509_v8 }
 0x7d5   : > { %3237 = vmatpush3.msra.mxu0 %v1602_v18 }
 0x7d6   : > { %3238 = vmatprep.subr.mxu0 %v3509_v8 }
 0x7d7   : > { %3239 = vmatpush3.msra.mxu0 %v1601_v19 }
 0x7d8   : > { %3264 = vmatprep.subr.mxu0 %v3509_v8 }
 0x888   : > { %v1474_v53 = vpop.f32.mrf.mxu0 }
 0x889   : > { %v1475_v54 = vadd.f32 %v3000_v52, %v1474_v53 }
 0x88a   : > { %v3212_v55 = vpop.f32.mrf.mxu0 }
 0x88b   : > { %v1478_v56 = vadd.f32 %v1475_v54, %v3707_v20  ;;  %v1509_v20 = vld [vmem:[%s4172_s10 + $0x8] sm:$0xff]  ;;  %v3008_v54 = vld [vmem:[%s4176_s14] ss:$0 sm:$0xff] }
 0x88c   : > { %3218 = vmatpush3.msra.mxu1 %v1509_v20 }
 0x88d   : > { %v1481_v57 = vsel %vm587_vm0, %v1478_v56, 0.0  ;;  %3219 = vmatprep.subr.mxu1 %v3509_v8 }
 0x88e   : > { %1482 = vadd.xlane.f32.xlu0 %v1481_v57  ;;  %3220 = vmatpush3.msra.mxu1 %v1508_v1 }
 0x88f   : > { %3243 = vmatprep.subr.mxu1 %v3509_v8 }
 0x917   : > { %v1483_v58 = vpop.xlane.xlu0 %1482 }
 0x918   : > { %v1484_v59 = vmul.f32 0.03125, %v1483_v58 }
 0x91a   : > { %v1485_v60 = vsub.f32 %v1478_v56, %v1484_v59  ;;  %v3009_v56 = vld [vmem:[%s4177_s15] ss:$0 sm:$0xff]  ;;  %v3015_v59 = vld [vmem:[%s4210_s5 + $0x1] ss:$0 sm:$0xff] }
 0x91c   : > { %v1486_v61 = vmul.f32 %v1485_v60, %v1485_v60 }
 0x91e   : > { %v1487_v62 = vsel %vm587_vm0, %v1486_v61, 0.0 }
 0x91f   : > { %1488 = vadd.xlane.f32.xlu1 %v1487_v62 }
 0x9a8   : > { %v1489_v2 = vpop.xlane.xlu1 %1488 }
 0x9a9   : > { %v1490_v3 = vmul.f32 0.03125, %v1489_v2 }
 0x9ab   : > { %v1491_v4 = vadd.f32 1e-05, %v1490_v3 }
 0x9ad   : > { %3419 = vrsqrt.f32 %v1491_v4 }
 0x9ba   : > { %v3420_v5 = vpop.eup %3419 }
 0x9bb   : > { %v1493_v7 = vmul.f32 %v3420_v5, %v1485_v60 }
 0x9bd   : > { %v1500_v10 = vmul.f32 %v3002_v6, %v1493_v7 }
 0x9bf   : > { %v1507_v11 = vadd.f32 %v3003_v9, %v1500_v10 }
 0x9c1   : > { %3222 = vmatmul.mubr.msk.f32.vlgmr.msra.gmra.mxu1 %vm587_vm0, %v1507_v11 }
 0x9c2   : > { %3251 = vmatprep.mubr.msk.f32.mxu1 %vm3510_vm1, %v3509_v8  ;;  %3244 = vmatpush3.msra.mxu1 %v3013_v46 }
 0x9c3   : > { %3245 = vmatprep.subr.mxu1 %v3509_v8 }
 0x9c4   : > { %3246 = vmatpush3.msra.mxu1 %v3012_v47 }
 0x9c5   : > { %3247 = vmatprep.subr.mxu1 %v3509_v8 }
 0x9c6   : > { %3248 = vmatpush3.msra.mxu1 %v3011_v48 }
 0x9c7   : > { %3249 = vmatprep.subr.mxu1 %v3509_v8 }
 0x9c8   : > { %3250 = vmatpush3.msra.mxu1 %v3010_v49 }
 0x9c9   : > { %3254 = vmatprep.subr.mxu1 %v3509_v8 }
 0xa81   : > { %v1588_v22 = vpop.f32.mrf.mxu1 }
 0xa82   : > { %v1589_v24 = vadd.f32 %v3004_v21, %v1588_v22 }
 0xa83   : > { %v3223_v25 = vpop.f32.mrf.mxu1 }
 0xa84   : > { %v1593_v26 = vmul.f32 0.044715, %v1589_v24  ;;  %v1592_v23 = vmul.f32 0.5, %v1589_v24 }
 0xa86   : > { %v1594_v27 = vmul.f32 %v1593_v26, %v1589_v24 }
 0xa88   : > { %v1595_v28 = vmul.f32 %v1594_v27, %v1589_v24 }
 0xa8a   : > { %v1596_v29 = vadd.f32 %v1595_v28, %v1589_v24 }
 0xa8c   : > { %v1597_v30 = vmul.f32 0.7978846, %v1596_v29 }
 0xa8e   : > { %3421 = vtanh.f32 %v1597_v30 }
 0xa9b   : > { %v3422_v31 = vpop.eup %3421 }
 0xa9c   : > { %v1599_v32 = vadd.f32 1.0, %v3422_v31 }
 0xa9e   : > { %v1600_v34 = vmul.f32 %v1599_v32, %v1592_v23 }
 0xaa0   : > { %3241 = vmatmul.mubr.msk.f32.vlgmr.msra.gmra.mxu0 %vm1616_vm5, %v1600_v34 }
 0xaa1   : > { %3266 = vmatprep.mubr.msk.f32.mxu0 %vm3510_vm1, %v3509_v8 }
 0xb60   : > { %v1686_v36 = vpop.f32.mrf.mxu0 }
 0xb61   : > { %v1687_v37 = vadd.f32 %v3006_v35, %v1686_v36 }
 0xb62   : > { %v3242_v38 = vpop.f32.mrf.mxu0 }
 0xb63   : > { %v1690_v39 = vadd.f32 %v1687_v37, %v1507_v11 }
 0xb65   : > { %v1693_v40 = vsel %vm587_vm0, %v1690_v39, 0.0 }
 0xb66   : > { %1694 = vadd.xlane.f32.xlu0 %v1693_v40 }
 0xbef   : > { %v1695_v41 = vpop.xlane.xlu0 %1694 }
 0xbf0   : > { %v1696_v42 = vmul.f32 0.03125, %v1695_v41 }
 0xbf2   : > { %v1697_v43 = vsub.f32 %v1690_v39, %v1696_v42 }
 0xbf4   : > { %v1698_v44 = vmul.f32 %v1697_v43, %v1697_v43 }
 0xbf6   : > { %v1699_v45 = vsel %vm587_vm0, %v1698_v44, 0.0 }
 0xbf7   : > { %1700 = vadd.xlane.f32.xlu0 %v1699_v45 }
 0xc80   : > { %v1701_v50 = vpop.xlane.xlu0 %1700 }
 0xc81   : > { %v1702_v51 = vmul.f32 0.03125, %v1701_v50 }
 0xc83   : > { %v1703_v52 = vadd.f32 1e-05, %v1702_v51 }
 0xc85   : > { %3423 = vrsqrt.f32 %v1703_v52 }
 0xc92   : > { %v3424_v53 = vpop.eup %3423 }
 0xc93   : > { %v1705_v55 = vmul.f32 %v3424_v53, %v1697_v43 }
 0xc95   : > { %v1712_v57 = vmul.f32 %v3008_v54, %v1705_v55 }
 0xc97   : > { %v3919_v58 = vadd.f32 %v3009_v56, %v1712_v57 }
 0xc99   : > { %3252 = vmatmul.mubr.msk.f32.vlgmr.msra.gmra.mxu1 %vm587_vm0, %v3919_v58 }
 0xc9a   : > { %3256 = vmatprep.mubr.msk.f32.mxu1 %vm3510_vm1, %v3509_v8 }
 0xd59   : > { %v1802_v60 = vpop.f32.mrf.mxu1 }
 0xd5a   : > { %v3928_v61 = vadd.f32 %v3015_v59, %v1802_v60 }
 0xd5b   : > { %v3253_v62 = vpop.f32.mrf.mxu1 }
 0xd5c   : > { %1974 = vrot.lane.b32.xlu1 %v3928_v61, %s4212_s26  ;;  %1807 = vrot.lane.b32.xlu0 %v3928_v61, %s4213_s29  ;;  %s4220_s26 = smov 48   ;;  %s4221_s29 = smov 40  }
 0xd60   : > { %1972 = vrot.lane.b32.xlu1 %v3928_v61, %s4214_s24  ;;  %2139 = vrot.lane.b32.xlu0 %v3928_v61, %s4215_s19  ;;  %s4222_s24 = smov 56   ;;  %s4223_s19 = smov 8  }
 0xd64   : > { %2141 = vrot.lane.b32.xlu1 %v3928_v61, %s4216_s22  ;;  %2306 = vrot.lane.b32.xlu0 %v3928_v61, %s4217_s20  ;;  %s4224_s22 = smov 16   ;;  %s4225_s20 = smov 24  }
 0xd68   : > { %2308 = vrot.lane.b32.xlu1 %v3928_v61, %s4218_s25 }
 0xdce   : > { %v1975_v63 = vpop.permute.xlu1 %1974  ;;  %v1808_v0 = vpop.permute.xlu0 %1807 }
 0xdcf   : > { %3255 = vmatpush3.xpose.msk.msra.mxu1 %vm706_vm2, %v1808_v0  ;;  %3265 = vmatpush3.xpose.msk.msra.mxu0 %vm706_vm2, %v1975_v63  ;;  %v3032_v0 = vld [vmem:[%s4168_s6 + $0x38] sm:$0xff] }
 0xdd0   : > { %3274 = vmatprep.subr.mxu0 %v3509_v8  ;;  %3259 = vmatprep.subr.mxu1 %v3509_v8 }
 0xdd2   : > { %v1973_v20 = vpop.permute.xlu1 %1972  ;;  %3257 = vmatmul.mubr.msk.f32.vlgmr.msra.gmra.mxu1 %vm706_vm2, %v3928_v61  ;;  %v2140_v2 = vpop.permute.xlu0 %2139 }
 0xdd3   : > { %3267 = vmatmul.mubr.msk.f32.vlgmr.msra.gmra.mxu0 %vm706_vm2, %v1973_v20  ;;  %3261 = vmatprep.mubr.msk.f32.mxu1 %vm3510_vm1, %v3509_v8  ;;  %v3031_v20 = vld [vmem:[%s4168_s6 + $0x30] sm:$0xff] }
 0xdd4   : > { %3276 = vmatprep.mubr.msk.f32.mxu0 %vm3510_vm1, %v3509_v8 }
 0xdd6   : > { %v2142_v1 = vpop.permute.xlu1 %2141  ;;  %v2307_v4 = vpop.permute.xlu0 %2306 }
 0xdd7   : > { %3275 = vmatpush3.xpose.msk.msra.mxu0 %vm706_vm2, %v2142_v1  ;;  %v3030_v1 = vld [vmem:[%s4168_s6 + $0x28] sm:$0xff] }
 0xdd8   : > { %3284 = vmatprep.subr.mxu0 %v3509_v8 }
 0xdda   : > { %v2309_v3 = vpop.permute.xlu1 %2308  ;;  %3277 = vmatmul.mubr.msk.f32.vlgmr.msra.gmra.mxu0 %vm706_vm2, %v2140_v2 }
 0xddb   : > { %3285 = vmatpush3.xpose.msk.msra.mxu0 %vm706_vm2, %v2309_v3  ;;  %3286 = vmatprep.mubr.msk.f32.mxu0 %vm3510_vm1, %v3509_v8  ;;  %v3029_v3 = vld [vmem:[%s4168_s6 + $0x20] sm:$0xff] }
 0xddc   : > { %3294 = vmatprep.subr.mxu0 %v3509_v8 }
 0xdde   : > { %3287 = vmatmul.mubr.msk.f32.vlgmr.msra.gmra.mxu0 %vm706_vm2, %v2307_v4 }
 0xddf   : > { %3302 = vmatprep.mubr.msk.f32.mxu0 %vm3510_vm1, %v3509_v8  ;;  %3295 = vmatpush3.msra.mxu0 %v3032_v0  ;;  %v3056_v0 = vld [vmem:[%s4175_s13 + $0x1] ss:$0 sm:$0xff] }
 0xde0   : > { %3296 = vmatprep.subr.mxu0 %v3509_v8 }
 0xde1   : > { %3297 = vmatpush3.msra.mxu0 %v3031_v20 }
 0xde2   : > { %3298 = vmatprep.subr.mxu0 %v3509_v8 }
 0xde3   : > { %3299 = vmatpush3.msra.mxu0 %v3030_v1 }
 0xde4   : > { %3300 = vmatprep.subr.mxu0 %v3509_v8 }
 0xde5   : > { %3301 = vmatpush3.msra.mxu0 %v3029_v3 }
 0xde6   : > { %3316 = vmatprep.subr.mxu0 %v3509_v8 }
 0xe92   : > { %v1879_v5 = vpop.f32.mrf.mxu1 }
 0xe93   : > { %v1883_v6 = vmul.f32 0.35355338, %v1879_v5  ;;  %v2046_v7 = vpop.f32.mrf.mxu0 }
 0xe94   : > { %v2050_v9 = vmul.f32 0.35355338, %v2046_v7  ;;  %v3258_v10 = vpop.f32.mrf.mxu1 }
 0xe95   : > { %v3268_v11 = vpop.f32.mrf.mxu0  ;;  %v1884_v12 = vadd.f32 %v1883_v6, %v3735_v33 }
 0xe96   : > { %v2051_v13 = vadd.f32 %v2050_v9, %v3735_v33 }
 0xe97   : > { %v1885_v14 = vsel %vm706_vm2, %v1884_v12, -inf }
 0xe98   : > { %1886 = vmax.xlane.f32.xlu1 %v1885_v14  ;;  %v2052_v15 = vsel %vm706_vm2, %v2051_v13, -inf }
 0xe99   : > { %2053 = vmax.xlane.f32.xlu0 %v2052_v15 }
 0xe9a   : > { %v2213_v16 = vpop.f32.mrf.mxu0 }
 0xe9b   : > { %v2217_v17 = vmul.f32 0.35355338, %v2213_v16 }
 0xe9c   : > { %v3278_v18 = vpop.f32.mrf.mxu0 }
 0xe9d   : > { %v2218_v19 = vadd.f32 %v2217_v17, %v3735_v33  ;;  %v3034_v18 = vld [vmem:[%s4169_s7 + $0x1] ss:$0 sm:$0xff] }
 0xe9e   : > { %v2380_v21 = vpop.f32.mrf.mxu0 }
 0xe9f   : > { %v2384_v22 = vmul.f32 0.35355338, %v2380_v21  ;;  %v2219_v24 = vsel %vm706_vm2, %v2218_v19, -inf }
 0xea0   : > { %2220 = vmax.xlane.f32.xlu0 %v2219_v24  ;;  %v3288_v25 = vpop.f32.mrf.mxu0 }
 0xea1   : > { %v2385_v26 = vadd.f32 %v2384_v22, %v3735_v33 }
 0xea3   : > { %v2386_v27 = vsel %vm706_vm2, %v2385_v26, -inf }
 0xea4   : > { %2387 = vmax.xlane.f32.xlu0 %v2386_v27 }
 0xea9   : > { %1896 = vrot.lane.b32.xlu1 %v3928_v61, %s4219_s21  ;;  %s3063_s21 = sshll.u32 %s3642_s0, 4 }
 0xf21   : > { %v1887_v28 = vpop.xlane.xlu1 %1886 }
 0xf22   : > { %v1888_v29 = vsub.f32 %v1884_v12, %v1887_v28  ;;  %v2054_v30 = vpop.xlane.xlu0 %2053 }
 0xf23   : > { %v2055_v31 = vsub.f32 %v2051_v13, %v2054_v30 }
 0xf24   : > { %v1889_v23 = vmul.f32 1.442695, %v1888_v29 }
 0xf25   : > { %v2056_v32 = vmul.f32 1.442695, %v2055_v31  ;;  %v1897_v34 = vpop.permute.xlu1 %1896  ;;  %v3043_v31 = vld [vmem:[%s4172_s10 + $0x38] sm:$0xff] }
 0xf26   : > { %3425 = vpow2.f32 %v1889_v23  ;;  %3260 = vmatpush3.msra.mxu1 %v1897_v34  ;;  %v3042_v23 = vld [vmem:[%s4172_s10 + $0x30] sm:$0xff] }
 0xf27   : > { %3427 = vpow2.f32 %v2056_v32  ;;  %3269 = vmatprep.subr.mxu1 %v3509_v8  ;;  %v3040_v32 = vld [vmem:[%s4172_s10 + $0x20] sm:$0xff] }
 0xf29   : > { %v2221_v35 = vpop.xlane.xlu0 %2220 }
 0xf2a   : > { %v2222_v33 = vsub.f32 %v2218_v19, %v2221_v35 }
 0xf2c   : > { %v2223_v36 = vmul.f32 1.442695, %v2222_v33 }
 0xf2d   : > { %v2388_v37 = vpop.xlane.xlu0 %2387 }
 0xf2e   : > { %3429 = vpow2.f32 %v2223_v36  ;;  %v2389_v38 = vsub.f32 %v2385_v26, %v2388_v37  ;;  %v3038_v37 = vld [vmem:[%s4170_s8 + $0x1] ss:$0 sm:$0xff] }
 0xf30   : > { %v2390_v39 = vmul.f32 1.442695, %v2389_v38 }
 0xf32   : > { %3431 = vpow2.f32 %v2390_v39  ;;  %v3039_v39 = vld [vmem:[%s4171_s9 + $0x1] ss:$0 sm:$0xff] }
 0xf33   : > { %v3426_v40 = vpop.eup %3425 }
 0xf34   : > { %v3428_v41 = vpop.eup %3427  ;;  %v1891_v42 = vsel %vm706_vm2, %v3426_v40, 0.0 }
 0xf35   : > { %1892 = vadd.xlane.f32.xlu1 %v1891_v42  ;;  %v2058_v43 = vsel %vm706_vm2, %v3428_v41, 0.0  ;;  %v3054_v42 = vld [vmem:[%s4174_s12 + $0x78] sm:$0xff] }
 0xf36   : > { %2059 = vadd.xlane.f32.xlu0 %v2058_v43  ;;  %v3053_v43 = vld [vmem:[%s4174_s12 + $0x70] sm:$0xff] }
 0xf3b   : > { %v3430_v44 = vpop.eup %3429 }
 0xf3c   : > { %v2225_v45 = vsel %vm706_vm2, %v3430_v44, 0.0 }
 0xf3d   : > { %2226 = vadd.xlane.f32.xlu1 %v2225_v45  ;;  %v3051_v45 = vld [vmem:[%s4174_s12 + $0x60] sm:$0xff] }
 0xf3f   : > { %v3432_v46 = vpop.eup %3431 }
 0xf40   : > { %v2392_v47 = vsel %vm706_vm2, %v3432_v46, 0.0 }
 0xf41   : > { %2393 = vadd.xlane.f32.xlu0 %v2392_v47  ;;  %v3049_v47 = vld [vmem:[%s4174_s12 + $0x50] sm:$0xff] }
 0xf4e   : > { %2230 = vrot.lane.b32.xlu1 %v3928_v61, %s4220_s26 }
 0xf52   : > { %2397 = vrot.lane.b32.xlu1 %v3928_v61, %s4221_s29 }
 0xf57   : > { %2063 = vrot.lane.b32.xlu0 %v3928_v61, %s4222_s24  ;;  %s4127_s24 = scalar_lea.hbm %s4180_s18, %s3063_s21 }
 0xfbe   : > { %v1893_v48 = vpop.xlane.xlu1 %1892 }
 0xfbf   : > { %3433 = vrcp.f32 %v1893_v48  ;;  %v2060_v49 = vpop.xlane.xlu0 %2059  ;;  %v3048_v48 = vld [vmem:[%s4174_s12 + $0x48] sm:$0xff] }
 0xfc0   : > { %3435 = vrcp.f32 %v2060_v49  ;;  %v3047_v49 = vld [vmem:[%s4174_s12 + $0x40] sm:$0xff] }
 0xfc6   : > { %v2227_v50 = vpop.xlane.xlu1 %2226 }
 0xfc7   : > { %3437 = vrcp.f32 %v2227_v50  ;;  %v3045_v50 = vld [vmem:[%s4173_s11 + $0x1] ss:$0 sm:$0xff] }
 0xfca   : > { %v2394_v51 = vpop.xlane.xlu0 %2393  ;;  %v2231_v56 = vpop.permute.xlu1 %2230 }
 0xfcb   : > { %3439 = vrcp.f32 %v2394_v51 }
 0xfcc   : > { %v3434_v52 = vpop.eup %3433 }
 0xfcd   : > { %v1895_v53 = vmul.f32 %v3434_v52, %v3426_v40  ;;  %v3436_v54 = vpop.eup %3435 }
 0xfce   : > { %v2064_v55 = vpop.permute.xlu0 %2063  ;;  %v2062_v57 = vmul.f32 %v3436_v54, %v3428_v41  ;;  %v2398_v61 = vpop.permute.xlu1 %2397 }
 0xfcf   : > { %3262 = vmatmul.mubr.msk.f32.vlgmr.msra.gmra.mxu1 %vm706_vm2, %v1895_v53 }
 0xfd0   : > { %3270 = vmatpush3.msra.mxu1 %v2064_v55  ;;  %3271 = vmatprep.mubr.msk.f32.mxu1 %vm3510_vm1, %v3509_v8 }
 0xfd1   : > { %3279 = vmatprep.subr.mxu1 %v3509_v8 }
 0xfd3   : > { %3272 = vmatmul.mubr.msk.f32.vlgmr.msra.gmra.mxu1 %vm706_vm2, %v2062_v57 }
 0xfd4   : > { %v3438_v59 = vpop.eup %3437  ;;  %3280 = vmatpush3.msra.mxu1 %v2231_v56  ;;  %3281 = vmatprep.mubr.msk.f32.mxu1 %vm3510_vm1, %v3509_v8 }
 0xfd5   : > { %3289 = vmatprep.subr.mxu1 %v3509_v8  ;;  %v2229_v60 = vmul.f32 %v3438_v59, %v3430_v44  ;;  %v3052_v44 = vld [vmem:[%s4174_s12 + $0x68] sm:$0xff] }
 0xfd7   : > { %3282 = vmatmul.mubr.msk.f32.vlgmr.msra.gmra.mxu1 %vm706_vm2, %v2229_v60 }
 0xfd8   : > { %v3440_v62 = vpop.eup %3439  ;;  %3290 = vmatpush3.msra.mxu1 %v2398_v61  ;;  %3291 = vmatprep.mubr.msk.f32.mxu1 %vm3510_vm1, %v3509_v8 }
 0xfd9   : > { %v2396_v63 = vmul.f32 %v3440_v62, %v3432_v46  ;;  %3305 = vmatprep.subr.mxu1 %v3509_v8  ;;  %v3050_v46 = vld [vmem:[%s4174_s12 + $0x58] sm:$0xff] }
 0xfdb   : > { %3292 = vmatmul.mubr.msk.f32.vlgmr.msra.gmra.mxu1 %vm706_vm2, %v2396_v63 }
 0xfdc   : > { %3313 = vmatprep.mubr.msk.f32.mxu1 %vm3510_vm1, %v3509_v8  ;;  %3306 = vmatpush3.msra.mxu1 %v3043_v31 }
 0xfdd   : > { %3307 = vmatprep.subr.mxu1 %v3509_v8 }
 0xfde   : > { %3308 = vmatpush3.msra.mxu1 %v3042_v23 }
 0xfdf   : > { %3309 = vmatprep.subr.mxu1 %v3509_v8 }
0x108f   : > { %v1968_v2 = vpop.f32.mrf.mxu1 }
0x1091   : > { %v3263_v4 = vpop.f32.mrf.mxu1 }
0x1093   : > { %v2135_v5 = vpop.f32.mrf.mxu1 }
0x1094   : > { %2474 = vrot.lane.b32.xlu1 %v2135_v5, %s4223_s19 }
0x1095   : > { %v3273_v6 = vpop.f32.mrf.mxu1 }
0x1097   : > { %v2302_v7 = vpop.f32.mrf.mxu1 }
0x1098   : > { %2478 = vrot.lane.b32.xlu0 %v2302_v7, %s4224_s22  ;;  %s575_s22 = sand.u32 1, %s3499_s28  }
0x1099   : > { %v3283_v9 = vpop.f32.mrf.mxu1  ;;  %s576_s3 = scalar_lea.vmem [#allocation2], %s575_s22  ;;  %s2903_s19 = scalar_lea.sflag [#allocation3], %s575_s22 }
0x109a   : > { %s2915_s4 = sshll.u32 %s576_s3, 4  ;;  %s2916_s4 = int_to_ptr.vmem [resolvable:$true] %s2915_s4 }
0x109b   : > { %v2469_v10 = vpop.f32.mrf.mxu1  ;;  %s3447_s5 = scalar_lea.vmem %s2916_s4, 16 }
0x109c   : > { %2482 = vrot.lane.b32.xlu1 %v2469_v10, %s4225_s20  ;;  %p3448_p11 = scmp.ne.s32.totalorder %s2916_s4, %s3447_s5  ;;  %s3525_s20 = smov [#allocation2]  }
0x109d   : > { %v3293_v11 = vpop.f32.mrf.mxu1  ;;  %s3451_s0 = sshll.u32 %s3525_s20, 4  ;;  %s3452_s0 = int_to_ptr.vmem [resolvable:$false] %s3451_s0 }
0x109e   : > { %v2826_v11 = vld [vmem:[%s4178_s16 + $0x18] sm:$0xff]  ;;  %p3449_p12 = pnand %p3448_p11, %p3659_p5  ;;  %s3453_s25 = scalar_lea.vmem %s3452_s0, 32 }
0x109f   : > { %p3454_p0 = scmp.lt.s32.totalorder %s2916_s4, %s3452_s0  ;;  %p3455_p1 = scmp.lt.s32.totalorder %s3453_s25, %s3447_s5 }
0x10a0   : > { %p3450_p13 = pneg %p3449_p12 }
0x10a1   : > { %p3456_p2 = por %p3455_p1, %p3454_p0 }
0x10a3   : > { %p3457_p3 = pnand %p3456_p2, %p3450_p13 }
0x1106   : > { %v2475_v12 = vpop.permute.xlu1 %2474 }
0x1107   : > { %v2485_v14 = vsel %vm706_vm2, %v1968_v2, %v2475_v12  ;;  %v2825_v12 = vld [vmem:[%s4178_s16 + $0x10] sm:$0xff] }
0x110a   : > { %v2479_v13 = vpop.permute.xlu0 %2478 }
0x110b   : > { %v2486_v15 = vsel %vm1390_vm3, %v2485_v14, %v2479_v13  ;;  %v2824_v13 = vld [vmem:[%s4178_s16 + $0x8] sm:$0xff]  ;;  %v2823_v14 = vld [vmem:[%s4178_s16] sm:$0xff] }
0x110e   : > { %v2483_v16 = vpop.permute.xlu1 %2482 }
0x110f   : > { %v2487_v17 = vsel %vm1392_vm4, %v2486_v15, %v2483_v16 }
0x1110   : > { %3303 = vmatmul.mubr.msk.f32.vlgmr.msra.gmra.mxu0 %vm587_vm0, %v2487_v17 }
0x1111   : > { %3332 = vmatprep.mubr.msk.f32.mxu0 %vm3510_vm1, %v3509_v8  ;;  %3317 = vmatpush3.msra.mxu0 %v3054_v42 }
0x1112   : > { %3318 = vmatprep.subr.mxu0 %v3509_v8 }
0x1113   : > { %3319 = vmatpush3.msra.mxu0 %v3053_v43 }
0x1114   : > { %3320 = vmatprep.subr.mxu0 %v3509_v8 }
0x1115   : > { %3321 = vmatpush3.msra.mxu0 %v3052_v44 }
0x1116   : > { %3322 = vmatprep.subr.mxu0 %v3509_v8 }
0x1117   : > { %3323 = vmatpush3.msra.mxu0 %v3051_v45 }
0x1118   : > { %3324 = vmatprep.subr.mxu0 %v3509_v8 }
0x1119   : > { %3325 = vmatpush3.msra.mxu0 %v3050_v46 }
0x111a   : > { %3326 = vmatprep.subr.mxu0 %v3509_v8 }
0x111b   : > { %3327 = vmatpush3.msra.mxu0 %v3049_v47 }
0x111c   : > { %3328 = vmatprep.subr.mxu0 %v3509_v8 }
0x111d   : > { %3329 = vmatpush3.msra.mxu0 %v3048_v48 }
0x111e   : > { %3330 = vmatprep.subr.mxu0 %v3509_v8 }
0x111f   : > { %3331 = vmatpush3.msra.mxu0 %v3047_v49 }
0x11d0   : > { %v2570_v19 = vpop.f32.mrf.mxu0 }
0x11d1   : > { %v2571_v21 = vadd.f32 %v3034_v18, %v2570_v19  ;;  %v3060_v19 = vld [vmem:[%s4176_s14 + $0x1] ss:$0 sm:$0xff] }
0x11d2   : > { %v3304_v22 = vpop.f32.mrf.mxu0 }
0x11d3   : > { %v2574_v24 = vadd.f32 %v2571_v21, %v3919_v58  ;;  %v3041_v58 = vld [vmem:[%s4172_s10 + $0x28] sm:$0xff]  ;;  %v3061_v22 = vld [vmem:[%s4177_s15 + $0x1] ss:$0 sm:$0xff] }
0x11d4   : > { %3310 = vmatpush3.msra.mxu1 %v3041_v58 }
0x11d5   : > { %v2579_v25 = vsel %vm587_vm0, %v2574_v24, 0.0  ;;  %3311 = vmatprep.subr.mxu1 %v3509_v8 }
0x11d6   : > { %2580 = vadd.xlane.f32.xlu0 %v2579_v25  ;;  %3312 = vmatpush3.msra.mxu1 %v3040_v32 }
0x11d7   : > { %3335 = vmatprep.subr.mxu1 %v3509_v8 }
0x125f   : > { %v2581_v26 = vpop.xlane.xlu0 %2580 }
0x1260   : > { %v2582_v27 = vmul.f32 0.03125, %v2581_v26 }
0x1262   : > { %v2583_v28 = vsub.f32 %v2574_v24, %v2582_v27 }
0x1264   : > { %v2584_v29 = vmul.f32 %v2583_v28, %v2583_v28 }
0x1266   : > { %v2585_v30 = vsel %vm587_vm0, %v2584_v29, 0.0 }
0x1267   : > { %2586 = vadd.xlane.f32.xlu1 %v2585_v30 }
0x12f0   : > { %v2587_v34 = vpop.xlane.xlu1 %2586 }
0x12f1   : > { %v2588_v35 = vmul.f32 0.03125, %v2587_v34 }
0x12f3   : > { %v2589_v33 = vadd.f32 1e-05, %v2588_v35 }
0x12f5   : > { %3441 = vrsqrt.f32 %v2589_v33 }
0x1302   : > { %v3442_v36 = vpop.eup %3441 }
0x1303   : > { %v2591_v38 = vmul.f32 %v3442_v36, %v2583_v28 }
0x1305   : > { %v2598_v40 = vmul.f32 %v3038_v37, %v2591_v38 }
0x1307   : > { %v2605_v41 = vadd.f32 %v3039_v39, %v2598_v40 }
0x1309   : > { %3314 = vmatmul.mubr.msk.f32.vlgmr.msra.gmra.mxu1 %vm587_vm0, %v2605_v41 }
0x130a   : > { %3343 = vmatprep.mubr.msk.f32.mxu1 %vm3510_vm1, %v3509_v8  ;;  %3336 = vmatpush3.msra.mxu1 %v2826_v11 }
0x130b   : > { %3337 = vmatprep.subr.mxu1 %v3509_v8 }
0x130c   : > { %3338 = vmatpush3.msra.mxu1 %v2825_v12 }
0x130d   : > { %3339 = vmatprep.subr.mxu1 %v3509_v8 }
0x130e   : > { %3340 = vmatpush3.msra.mxu1 %v2824_v13 }
0x130f   : > { %3341 = vmatprep.subr.mxu1 %v3509_v8  ;;  %v2827_v8 = vld [vmem:[%s4179_s17] sm:$0x1] }
0x1310   : > { %3342 = vmatpush3.msra.mxu1 %v2823_v14 }
0x13c9   : > { %v2688_v51 = vpop.f32.mrf.mxu1 }
0x13ca   : > { %v2689_v52 = vadd.f32 %v3045_v50, %v2688_v51 }
0x13cb   : > { %v3315_v53 = vpop.f32.mrf.mxu1 }
0x13cc   : > { %v2693_v54 = vmul.f32 0.044715, %v2689_v52  ;;  %v2692_v61 = vmul.f32 0.5, %v2689_v52 }
0x13ce   : > { %v2694_v55 = vmul.f32 %v2693_v54, %v2689_v52 }
0x13d0   : > { %v2695_v56 = vmul.f32 %v2694_v55, %v2689_v52 }
0x13d2   : > { %v2696_v57 = vadd.f32 %v2695_v56, %v2689_v52 }
0x13d4   : > { %v2697_v59 = vmul.f32 0.7978846, %v2696_v57 }
0x13d6   : > { %3443 = vtanh.f32 %v2697_v59 }
0x13e3   : > { %v3444_v60 = vpop.eup %3443 }
0x13e4   : > { %v2699_v62 = vadd.f32 1.0, %v3444_v60 }
0x13e6   : > { %v2700_v63 = vmul.f32 %v2699_v62, %v2692_v61 }
0x13e8   : > { %3333 = vmatmul.mubr.msk.f32.vlgmr.msra.gmra.mxu0 %vm1616_vm5, %v2700_v63 }
0x14a8   : > { %v2787_v20 = vpop.f32.mrf.mxu0 }
0x14a9   : > { %v2788_v1 = vadd.f32 %v3056_v0, %v2787_v20 }
0x14aa   : > { %v3334_v2 = vpop.f32.mrf.mxu0 }
0x14ab   : > { %v2791_v3 = vadd.f32 %v2788_v1, %v2605_v41 }
0x14ad   : > { %v2796_v4 = vsel %vm587_vm0, %v2791_v3, 0.0 }
0x14ae   : > { %2797 = vadd.xlane.f32.xlu0 %v2796_v4 }
0x1537   : > { %v2798_v5 = vpop.xlane.xlu0 %2797 }
0x1538   : > { %v2799_v6 = vmul.f32 0.03125, %v2798_v5 }
0x153a   : > { %v2800_v7 = vsub.f32 %v2791_v3, %v2799_v6 }
0x153c   : > { %v2801_v9 = vmul.f32 %v2800_v7, %v2800_v7 }
0x153e   : > { %v2802_v10 = vsel %vm587_vm0, %v2801_v9, 0.0 }
0x153f   : > { %2803 = vadd.xlane.f32.xlu0 %v2802_v10 }
0x15c8   : > { %v2804_v15 = vpop.xlane.xlu0 %2803 }
0x15c9   : > { %v2805_v16 = vmul.f32 0.03125, %v2804_v15 }
0x15cb   : > { %v2806_v17 = vadd.f32 1e-05, %v2805_v16 }
0x15cd   : > { %3445 = vrsqrt.f32 %v2806_v17 }
0x15da   : > { %v3446_v18 = vpop.eup %3445 }
0x15db   : > { %v2808_v21 = vmul.f32 %v3446_v18, %v2800_v7 }
0x15dd   : > { %v2815_v24 = vmul.f32 %v3060_v19, %v2808_v21 }
0x15df   : > { %v2822_v25 = vadd.f32 %v3061_v22, %v2815_v24 }
0x15e1   : > { %3344 = vmatmul.mubr.msk.f32.vlgmr.msra.gmra.mxu1 %vm587_vm0, %v2822_v25 }
0x16a1   : > { %v2897_v26 = vpop.f32.mrf.mxu1 }
0x16a2   : > { %v2898_v27 = vadd.f32 %v2897_v26, %v2827_v8 }
0x16a3   : > { %v3345_v28 = vpop.f32.mrf.mxu1 }
0x16a4   : > { %2901 = vst [vmem:[%s576_s3] sm:$0x1] %v2898_v27 }
0x16a5   : > { %3460 = shalt.err (!%p3457_p3)
}
0x16a6   : > { %s3461_s3 = scalar_lea.hbm %s4127_s24, 16  ;;  %s3465_s26 = scalar_lea.hbm %s4180_s18, 32 }
0x16a7   : > { %p3462_p4 = scmp.ne.s32.totalorder %s4127_s24, %s3461_s3  ;;  %p3466_p9 = scmp.lt.s32.totalorder %s4127_s24, %s4180_s18 }
0x16a8   : > { %p3467_p10 = scmp.lt.s32.totalorder %s3465_s26, %s3461_s3 }
0x16a9   : > { %p3463_p7 = pnand %p3462_p4, %p3659_p5 }
0x16aa   : > { %p3468_p11 = por %p3467_p10, %p3466_p9 }
0x16ab   : > { %p3464_p8 = pneg %p3463_p7 }
0x16ad   : > { %p3469_p12 = pnand %p3468_p11, %p3464_p8 }
0x16af   : > { %3472 = shalt.err (!%p3469_p12)
}
0x16b0   : > { %3346 = dma.vmem_to_hbm [thread:$0]  (%p3659_p5), %s2916_s4, 16, %s4127_s24, %s2903_s19  }
0x16b1 PF: > { %p3352_p13 = scmp.ge.s32.totalorder %s3507_s30, 2  ;;  %s2927_s5 = sand.u32 1, %s3495_s27  }
0x16b2   : > { %s2928_s0 = scalar_lea.sflag [#allocation3], %s2927_s5 }
0x16b3   : > { %p3349_p0 = pnand %p3352_p13, %p3663_p6 }
0x16b5   : > { %p3350_p1 = pneg %p3349_p0 }
0x16b7   : > { %3490 = dma.done.wait (%p3350_p1), %s2928_s0, 16  }
0x16b8   : > { %3492 = vsyncadd (%p3350_p1), %s2928_s0, 4294967280  ;;  %s4226_s25 = sld [smem:[#allocation5_spill]]  ;;  %p28_p2 = scmp.ge.s32.totalorder %s3646_s1, 4  }
0x16b9   : > { %s4227_s29 = sld [smem:[#allocation6_spill]]  ;;  %s4228_s27 = smov %s3499_s28 }
0x16ba   : > { %s4230_s30 = smov %s3646_s1  ;;  %30 = sbr.rel (!%p28_p2) target bundleno = 10 (0xa), region = 142 }
0x16be   : > { %s4229_s28 = smov %s4226_s25 }
0x16bf   :  { %2932 = vsyncpa [#allocation3], 1 }
0x16c0   :  { %2934 = vsyncpa [#allocation3 + $0x1], 1 }

</bundles_post_ra>
